<compile_context>
chip_gen: v6e
topology: v6e:2x2x1
jax: 0.10.0
libtpu: 0.0.40
codegen_flags: <defaults>
</compile_context>

<pallas_src>
import jax
import jax.numpy as jnp
from jax.experimental import pallas as pl
from jax.experimental.pallas import tpu as pltpu


def _disc_kernel(z_ref, w1_ref, b1_ref, w2_ref, b2_ref, w3_ref, b3_ref, o_ref):
    # Layer 1: Linear(latent_dim, 512) + (dropout = identity) + ReLU. MXU, f32 accumulate.
    h1 = jnp.dot(z_ref[...], w1_ref[...], preferred_element_type=jnp.float32)
    h1 = jnp.maximum(h1 + b1_ref[...], 0.0)

    # Layer 2: Linear(512, 256) + (dropout = identity) + ReLU.
    h2 = jnp.dot(h1.astype(w2_ref.dtype), w2_ref[...], preferred_element_type=jnp.float32)
    h2 = jnp.maximum(h2 + b2_ref[...], 0.0)

    # Layer 3: Linear(256, 1) + Sigmoid. An N=1 matmul would use 1 of 128/256 MXU output
    # columns, so do it as a VPU multiply + XLU lane reduction instead (idle VLIW slots).
    logits = jnp.sum(h2 * w3_ref[...], axis=-1, keepdims=True) + b3_ref[0, 0]

    # TODO(synk): a lane-dense (1, TILE_B) output slab would avoid masked stores of the
    # last-dim-1 block; absolute store bytes here are tiny, so keep the simple layout.
    o_ref[...] = jax.nn.sigmoid(logits).astype(o_ref.dtype)


def _round_up(x, m):
    return ((x + m - 1) // m) * m


def discriminator_forward(z, w1, b1, w2, b2, w3, b3, *, tile_b=512,
                          matmul_dtype=jnp.bfloat16):
    """Fused batch-tiled MLP forward (eval-mode dropout).

    Weights are stored already transposed as (in_features, out_features) so the kernel
    computes z @ W + b. `matmul_dtype` controls the dtype fed to the MXU (bf16 by default,
    f32 accumulation); pass None for an all-f32 path.
    """
    B, latent_dim = z.shape
    assert w1.shape[0] == latent_dim

    # Tile the batch: multiple of 8 (f32 sublane), default 512 rows to fill the MXU.
    tile_b = max(8, min(int(tile_b), _round_up(B, 8)))
    tile_b = _round_up(tile_b, 8)
    b_pad = _round_up(B, tile_b)
    if b_pad != B:
        z = jnp.pad(z, ((0, b_pad - B), (0, 0)))
    grid = (pl.cdiv(b_pad, tile_b),)

    # Layout plumbing (outside the kernel): matmul operands in bf16, small operands in f32,
    # last-layer weight as a (1, 256) row for the VPU reduction, b3 as an SMEM scalar.
    if matmul_dtype is not None:
        z_c, w1_c, w2_c = (a.astype(matmul_dtype) for a in (z, w1, w2))
    else:
        z_c, w1_c, w2_c = z, w1, w2
    b1_2d = jnp.reshape(b1, (1, -1)).astype(jnp.float32)
    b2_2d = jnp.reshape(b2, (1, -1)).astype(jnp.float32)
    w3_row = jnp.reshape(w3, (1, -1)).astype(jnp.float32)
    b3_s = jnp.reshape(b3, (1, 1)).astype(jnp.float32)

    const = lambda i: (0, 0)  # weights/biases: constant block index -> stay VMEM-resident
    out = pl.pallas_call(
        _disc_kernel,
        out_shape=jax.ShapeDtypeStruct((b_pad, 1), jnp.float32),
        grid_spec=pltpu.PrefetchScalarGridSpec(
            num_scalar_prefetch=0,
            grid=grid,
            in_specs=[
                pl.BlockSpec((tile_b, latent_dim), lambda i: (i, 0)),  # z batch tile
                pl.BlockSpec(w1_c.shape, const),
                pl.BlockSpec(b1_2d.shape, const),
                pl.BlockSpec(w2_c.shape, const),
                pl.BlockSpec(b2_2d.shape, const),
                pl.BlockSpec(w3_row.shape, const),
                pl.BlockSpec(memory_space=pltpu.MemorySpace.SMEM),     # b3 scalar
            ],
            out_specs=pl.BlockSpec((tile_b, 1), lambda i: (i, 0)),
        ),
        compiler_params=pltpu.CompilerParams(
            # Batch axis is embarrassingly parallel -> lets v7x shard it across both TCs.
            dimension_semantics=("parallel",),
            # Resident weights ~0.6 MiB + double-buffered z/out tiles + activations
            # ~3-4 MiB at TILE_B=512; 16 MiB leaves Mosaic scratch headroom and stays well
            # under v7x's 64 MiB physical VMEM.
            vmem_limit_bytes=16 << 20,
        ),
    )(z_c, w1_c, b1_2d, w2_c, b2_2d, w3_row, b3_s)

    return out[:B] if b_pad != B else out


def init_params(key, latent_dim):
    """Deterministic synthetic parameters with nn.Linear-like uniform init.
    Stored as (in_features, out_features) so the kernel computes z @ W + b."""
    k1, k2, k3, k4, k5, k6 = jax.random.split(key, 6)

    def lin(kw, kb, fan_in, fan_out):
        bound = 1.0 / jnp.sqrt(fan_in)
        w = jax.random.uniform(kw, (fan_in, fan_out), jnp.float32, -bound, bound)
        b = jax.random.uniform(kb, (1, fan_out), jnp.float32, -bound, bound)
        return w, b

    w1, b1 = lin(k1, k2, latent_dim, 512)
    w2, b2 = lin(k3, k4, 512, 256)
    w3, b3 = lin(k5, k6, 256, 1)
    return w1, b1, w2, b2, w3, b3


if __name__ == "__main__":
    key = jax.random.PRNGKey(0)
    kz, kp = jax.random.split(key)

    # Small shapes; B=300 is deliberately not a multiple of the tile to exercise padding
    # and a multi-step grid.
    B, latent_dim = 300, 32
    z = jax.random.normal(kz, (B, latent_dim), dtype=jnp.float32)
    params = init_params(kp, latent_dim)
    w1, b1, w2, b2, w3, b3 = params

    def ref_forward(zz, cast_dtype=None):
        c = (lambda a: a.astype(cast_dtype)) if cast_dtype is not None else (lambda a: a)
        h1 = jnp.maximum(jnp.dot(c(zz), c(w1), preferred_element_type=jnp.float32) + b1, 0.0)
        h2 = jnp.maximum(jnp.dot(c(h1), c(w2), preferred_element_type=jnp.float32) + b2, 0.0)
        return jax.nn.sigmoid(h2 @ w3 + b3)

    # 1) Exact f32 path (matmul_dtype=None), small tile -> 3-step grid with padding.
    out_f32 = jax.block_until_ready(
        discriminator_forward(z, *params, tile_b=128, matmul_dtype=None))
    assert out_f32.shape == (B, 1)
    assert jnp.allclose(out_f32, ref_forward(z), atol=1e-5), "f32 path mismatch"

    # 2) Default perf path: bf16 MXU inputs, f32 accumulation, TILE_B=512 (single tile here).
    out_bf16 = jax.block_until_ready(discriminator_forward(z, *params))
    assert out_bf16.shape == (B, 1)
    assert jnp.allclose(out_bf16, ref_forward(z, jnp.bfloat16), atol=2e-3), \
        "bf16 path mismatch vs bf16-cast reference"
    assert jnp.allclose(out_bf16, ref_forward(z), atol=2e-2), \
        "bf16 path drifted too far from f32 reference"

    print("KERNEL_OK")
</pallas_src>

<mosaic_0001>
module attributes {stable_mosaic.version = 11 : i64} {
  func.func @_disc_kernel(%arg0: i32, %arg1: memref<128x32xf32, #tpu.memory_space<vmem>>, %arg2: memref<32x512xf32, #tpu.memory_space<vmem>>, %arg3: memref<1x512xf32, #tpu.memory_space<vmem>>, %arg4: memref<512x256xf32, #tpu.memory_space<vmem>>, %arg5: memref<1x256xf32, #tpu.memory_space<vmem>>, %arg6: memref<1x256xf32, #tpu.memory_space<vmem>>, %arg7: memref<1x1xf32, #tpu.memory_space<smem>>, %arg8: memref<128x1xf32, #tpu.memory_space<vmem>>) attributes {dimension_semantics = [#tpu.dimension_semantics<parallel>], iteration_bounds = array<i64: 3>, scalar_prefetch = 0 : i64, scratch_operands = 0 : i64, tpu.core_type = #tpu.core_type<tc>, window_params = [{transform_indices = @transform_0, window_bounds = array<i64: 128, 32>}, {pipeline_mode = #tpu.pipeline_mode<synchronous>, transform_indices = @transform_1, window_bounds = array<i64: 32, 512>}, {pipeline_mode = #tpu.pipeline_mode<synchronous>, transform_indices = @transform_2, window_bounds = array<i64: 1, 512>}, {pipeline_mode = #tpu.pipeline_mode<synchronous>, transform_indices = @transform_3, window_bounds = array<i64: 512, 256>}, {pipeline_mode = #tpu.pipeline_mode<synchronous>, transform_indices = @transform_4, window_bounds = array<i64: 1, 256>}, {pipeline_mode = #tpu.pipeline_mode<synchronous>, transform_indices = @transform_5, window_bounds = array<i64: 1, 256>}, {transform_indices = @transform_6, window_bounds = array<i64: 1, 1>}, {transform_indices = @transform_7, window_bounds = array<i64: 128, 1>}]} {
    %c0 = arith.constant 0 : index
    %c0_0 = arith.constant 0 : index
    %0 = vector.load %arg1[%c0, %c0_0] : memref<128x32xf32, #tpu.memory_space<vmem>>, vector<128x32xf32>
    %c0_1 = arith.constant 0 : index
    %c0_2 = arith.constant 0 : index
    %1 = vector.load %arg2[%c0_1, %c0_2] : memref<32x512xf32, #tpu.memory_space<vmem>>, vector<32x512xf32>
    %cst = arith.constant dense<0.000000e+00> : vector<128x512xf32>
    %2 = tpu.matmul %0, %1, %cst {dimension_numbers = #tpu.dot_dimension_numbers<[1], [0], [0], [1], [0, 0, 1, 1], [], []>} : vector<128x32xf32>, vector<32x512xf32>, vector<128x512xf32> -> vector<128x512xf32>
    %c0_3 = arith.constant 0 : index
    %c0_4 = arith.constant 0 : index
    %3 = vector.load %arg3[%c0_3, %c0_4] : memref<1x512xf32, #tpu.memory_space<vmem>>, vector<1x512xf32>
    %4 = vector.broadcast %3 : vector<1x512xf32> to vector<128x512xf32>
    %5 = arith.addf %2, %4 : vector<128x512xf32>
    %cst_5 = arith.constant 0.000000e+00 : f32
    %6 = vector.broadcast %cst_5 : f32 to vector<128x512xf32>
    %7 = arith.maximumf %5, %6 : vector<128x512xf32>
    %c0_6 = arith.constant 0 : index
    %c0_7 = arith.constant 0 : index
    %8 = vector.load %arg4[%c0_6, %c0_7] : memref<512x256xf32, #tpu.memory_space<vmem>>, vector<512x256xf32>
    %cst_8 = arith.constant dense<0.000000e+00> : vector<128x256xf32>
    %9 = tpu.matmul %7, %8, %cst_8 {dimension_numbers = #tpu.dot_dimension_numbers<[1], [0], [0], [1], [0, 0, 1, 1], [], []>} : vector<128x512xf32>, vector<512x256xf32>, vector<128x256xf32> -> vector<128x256xf32>
    %c0_9 = arith.constant 0 : index
    %c0_10 = arith.constant 0 : index
    %10 = vector.load %arg5[%c0_9, %c0_10] : memref<1x256xf32, #tpu.memory_space<vmem>>, vector<1x256xf32>
    %11 = vector.broadcast %10 : vector<1x256xf32> to vector<128x256xf32>
    %12 = arith.addf %9, %11 : vector<128x256xf32>
    %cst_11 = arith.constant 0.000000e+00 : f32
    %13 = vector.broadcast %cst_11 : f32 to vector<128x256xf32>
    %14 = arith.maximumf %12, %13 : vector<128x256xf32>
    %c0_12 = arith.constant 0 : index
    %c0_13 = arith.constant 0 : index
    %15 = vector.load %arg6[%c0_12, %c0_13] : memref<1x256xf32, #tpu.memory_space<vmem>>, vector<1x256xf32>
    %16 = vector.broadcast %15 : vector<1x256xf32> to vector<128x256xf32>
    %17 = arith.mulf %14, %16 : vector<128x256xf32>
    %cst_14 = arith.constant dense<0.000000e+00> : vector<128xf32>
    %18 = vector.multi_reduction <add>, %17, %cst_14 [1] : vector<128x256xf32> to vector<128xf32>
    %19 = vector.shape_cast %18 : vector<128xf32> to vector<128x1xf32>
    %c0_15 = arith.constant 0 : index
    %c0_16 = arith.constant 0 : index
    %20 = memref.load %arg7[%c0_15, %c0_16] : memref<1x1xf32, #tpu.memory_space<smem>>
    %21 = vector.broadcast %20 : f32 to vector<128x1xf32>
    %22 = arith.addf %19, %21 : vector<128x1xf32>
    %23 = arith.negf %22 : vector<128x1xf32>
    %24 = math.exp %23 : vector<128x1xf32>
    %cst_17 = arith.constant 1.000000e+00 : f32
    %25 = vector.broadcast %cst_17 : f32 to vector<128x1xf32>
    %26 = arith.addf %25, %24 : vector<128x1xf32>
    %27 = arith.divf %25, %26 : vector<128x1xf32>
    %c0_18 = arith.constant 0 : index
    %c0_19 = arith.constant 0 : index
    %28 = vector.load %arg8[%c0_18, %c0_19] : memref<128x1xf32, #tpu.memory_space<vmem>>, vector<128x1xf32>
    tpu.vector_store %arg8[%c0_18, %c0_19], %27 {strides = array<i32>} : memref<128x1xf32, #tpu.memory_space<vmem>>, vector<128x1xf32>,
    return
  }
  func.func @transform_0(%arg0: i32) -> (i32, i32) {
    %c0_i32 = arith.constant 0 : i32
    %c0_i32_0 = arith.constant 0 : i32
    return %arg0, %c0_i32 : i32, i32
  }
  func.func @transform_1(%arg0: i32) -> (i32, i32) {
    %c0_i32 = arith.constant 0 : i32
    %c0_i32_0 = arith.constant 0 : i32
    %c0_i32_1 = arith.constant 0 : i32
    return %c0_i32, %c0_i32_0 : i32, i32
  }
  func.func @transform_2(%arg0: i32) -> (i32, i32) {
    %c0_i32 = arith.constant 0 : i32
    %c0_i32_0 = arith.constant 0 : i32
    %c0_i32_1 = arith.constant 0 : i32
    return %c0_i32, %c0_i32_0 : i32, i32
  }
  func.func @transform_3(%arg0: i32) -> (i32, i32) {
    %c0_i32 = arith.constant 0 : i32
    %c0_i32_0 = arith.constant 0 : i32
    %c0_i32_1 = arith.constant 0 : i32
    return %c0_i32, %c0_i32_0 : i32, i32
  }
  func.func @transform_4(%arg0: i32) -> (i32, i32) {
    %c0_i32 = arith.constant 0 : i32
    %c0_i32_0 = arith.constant 0 : i32
    %c0_i32_1 = arith.constant 0 : i32
    return %c0_i32, %c0_i32_0 : i32, i32
  }
  func.func @transform_5(%arg0: i32) -> (i32, i32) {
    %c0_i32 = arith.constant 0 : i32
    %c0_i32_0 = arith.constant 0 : i32
    %c0_i32_1 = arith.constant 0 : i32
    return %c0_i32, %c0_i32_0 : i32, i32
  }
  func.func @transform_6(%arg0: i32) -> (i32, i32) {
    %c0_i32 = arith.constant 0 : i32
    %c0_i32_0 = arith.constant 0 : i32
    %c0_i32_1 = arith.constant 0 : i32
    return %c0_i32, %c0_i32_0 : i32, i32
  }
  func.func @transform_7(%arg0: i32) -> (i32, i32) {
    %c0_i32 = arith.constant 0 : i32
    %c0_i32_0 = arith.constant 0 : i32
    return %arg0, %c0_i32 : i32, i32
  }
}

</mosaic_0001>

<bundles_post_ra>
// kernel: tpu_custom_call.1
= control target key start
LH: loop header
LB: loop body
LE: loop exit
PB: predicated region body
PF: predicated region fallthrough
CT: control target
= control target key end

     0   :  { %s2194_s0 = inlined_call_operand.vmem [shape: f32[384,32], index: 0, kind: input, shape index: {}]   ;;  %s2195_s1 = inlined_call_operand.vmem [shape: f32[32,512], index: 1, kind: input, shape index: {}]   ;;  %s2196_s2 = inlined_call_operand.vmem [shape: f32[1,512], index: 2, kind: input, shape index: {}]   ;;  %s2197_s3 = inlined_call_operand.hbm [shape: f32[512,256], index: 3, kind: input, shape index: {}]   ;;  %s2198_s4 = inlined_call_operand.vmem [shape: f32[1,256], index: 4, kind: input, shape index: {}]   ;;  %s2199_s5 = inlined_call_operand.vmem [shape: f32[1,256], index: 5, kind: input, shape index: {}]   ;;  %s2200_s6 = inlined_call_operand.<no memory space> [shape: f32[1,1], index: 6, kind: input, shape index: {}]   ;;  %s2201_s7 = inlined_call_operand.vmem [shape: f32[384,1], index: 7, kind: output, shape index: {}]  }
   0x1   :  { %12 = sst [smem:[#allocation2]] %s2200_s6 }
   0x2   :  { %13 = vsyncpa [#allocation4], 0  ;;  %s1804_s26 = smov 0  }
   0x3 LB: > { %s1572_s27 = sadd.s32 4294967295, %s1755_s26   ;;  %p1574_p0 = scmp.ge.s32.totalorder %s1755_s26, 1  ;;  %s1755_s26 = sphi %s1804_s26, %s19_s26  }
   0x4   : > { %p202_p1 = scmp.lt.s32.totalorder %s1755_s26, 4  ;;  %s1757_s28 = smov [#allocation3]  }
   0x5   : > { %s220_s29 = sshll.u32 %s1757_s28, 4  ;;  %p1816_p3 = scmp.eq.s32.totalorder %s1572_s27, 0  ;;  %s221_s29 = int_to_ptr.vmem [resolvable:$true] %s220_s29 }
   0x6   : > { %p1812_p2 = pnand %p1574_p0, %p202_p1  ;;  %s1730_s8 = scalar_lea.vmem %s221_s29, 16384 }
   0x7   : > { %p1731_p7 = scmp.ne.s32.totalorder %s221_s29, %s1730_s8  ;;  %p1738_p10 = scmp.lt.s32.totalorder %s221_s29, %s221_s29 }
   0x8   : > { %p1637_p4 = pneg %p1812_p2  ;;  %p1739_p11 = scmp.lt.s32.totalorder %s1730_s8, %s1730_s8 }
   0xa   : > { %p1638_p5 = pnand %p1816_p3, %p1637_p4  ;;  %p1740_p12 = por %p1739_p11, %p1738_p10 }
   0xc   : > { %p1721_p6 = pneg %p1638_p5 }
   0xe   : > { %p1733_p8 = pnand %p1731_p7, %p1721_p6 }
  0x10   : > { %p1734_p9 = pneg %p1733_p8 }
  0x12   : > { %p1741_p13 = pnand %p1740_p12, %p1734_p9 }
  0x14   : > { %1744 = shalt.err (!%p1741_p13)
}
  0x15   : > { %s1758_s9 = smov 256   ;;  %s1759_s10 = smov 16  }
  0x16   : > { %1640 = dma.hbm_to_vmem [thread:$0]  (!%p1638_p5), %s2197_s3, 16384, %s221_s29, [#allocation4], %s1758_s9, %s1758_s9, %s1759_s10  }
  0x17   : > { %254 = sbr.rel (%p1812_p2) target bundleno = 677 (0x2a5), region = 48 }
  0x1c   : > { %1750 = dma.done.wait (%p1816_p3), [#allocation4], 16384  }
  0x1d   : > { %1752 = vsyncadd (%p1816_p3), [#allocation4], 4294950912  ;;  %s1579_s13 = sshll.u32 %s1572_s27, 4  ;;  %v1760_v0 = vmov 0.0   ;;  %v327_v1 = vld [vmem:[%s2195_s1 + $0x68] sm:$0xff]  ;;  %v329_v2 = vld [vmem:[%s2195_s1 + $0x78] sm:$0xff] }
  0x1e   : > { %465 = vmatprep.mubr.f32.mxu0 %v1760_v0  ;;  %626 = vmatprep.mubr.f32.mxu1 %v1760_v0  ;;  %p287_p0 = scmp.lt.s32.totalorder %s1579_s13, 47  ;;  %v326_v3 = vld [vmem:[%s2195_s1 + $0x60] sm:$0xff]  ;;  %v328_v4 = vld [vmem:[%s2195_s1 + $0x70] sm:$0xff]  ;;  %v323_v5 = vld [vmem:[%s2195_s1 + $0x48] sm:$0xff]  ;;  %vm352_vm0 = vcmask 261120   ;;  %s1373_s12 = sld [smem:[#allocation2]] }
  0x1f   : > { %425 = vmatprep.subr.mxu0 %v327_v1  ;;  %586 = vmatprep.subr.mxu1 %v329_v2  ;;  %v325_v6 = vld [vmem:[%s2195_s1 + $0x58] sm:$0xff]  ;;  %v322_v7 = vld [vmem:[%s2195_s1 + $0x40] sm:$0xff]  ;;  %v324_v8 = vld [vmem:[%s2195_s1 + $0x50] sm:$0xff]  ;;  %vm1487_vm1 = vcmask 7168  }
  0x20   : > { %s2205_s13 = smov (!%p287_p0, %s1579_s13), 47  ;;  %426 = vmatpush1.msra.mxu0 %v326_v3  ;;  %587 = vmatpush1.msra.mxu1 %v328_v4  ;;  %v319_v9 = vld [vmem:[%s2195_s1 + $0x28] sm:$0xff]  ;;  %v321_v10 = vld [vmem:[%s2195_s1 + $0x38] sm:$0xff]  ;;  %v318_v11 = vld [vmem:[%s2195_s1 + $0x20] sm:$0xff] }
  0x21   : > { %s1580_s20 = sshll.u32 %s2205_s13, 3  ;;  %427 = vmatprep.subr.mxu0 %v323_v5  ;;  %588 = vmatprep.subr.mxu1 %v325_v6  ;;  %v320_v12 = vld [vmem:[%s2195_s1 + $0x30] sm:$0xff]  ;;  %v315_v13 = vld [vmem:[%s2195_s1 + $0x8] sm:$0xff]  ;;  %v317_v14 = vld [vmem:[%s2195_s1 + $0x18] sm:$0xff] }
  0x22   : > { %s1879_s19 = scalar_lea.vmem %s2194_s0, %s1580_s20  ;;  %428 = vmatpush1.msra.mxu0 %v322_v7  ;;  %589 = vmatpush1.msra.mxu1 %v324_v8  ;;  %v314_v15 = vld [vmem:[%s2195_s1] sm:$0xff]  ;;  %v316_v16 = vld [vmem:[%s2195_s1 + $0x10] sm:$0xff]  ;;  %v818_v19 = vld [vmem:[#allocation3 + $0xf8] sm:$0xff]  ;;  %s2149_s16 = scalar_lea.vmem %s2201_s7, %s1580_s20 }
  0x23   : > { %429 = vmatprep.subr.mxu0 %v319_v9  ;;  %590 = vmatprep.subr.mxu1 %v321_v10  ;;  %v298_v17 = vld [vmem:[%s1879_s19] sm:$0xff]  ;;  %v299_v18 = vld [vmem:[%s1879_s19 + $0x8] sm:$0xff]  ;;  %v817_v20 = vld [vmem:[#allocation3 + $0xf0] sm:$0xff] }
  0x24   : > { %430 = vmatpush1.msra.mxu0 %v318_v11  ;;  %591 = vmatpush1.msra.mxu1 %v320_v12  ;;  %v882_v21 = vld [vmem:[#allocation3 + $0x2f8] sm:$0xff]  ;;  %v816_v22 = vld [vmem:[#allocation3 + $0xe8] sm:$0xff]  ;;  %v881_v23 = vld [vmem:[#allocation3 + $0x2f0] sm:$0xff] }
  0x25   : > { %431 = vmatprep.subr.mxu0 %v315_v13  ;;  %592 = vmatprep.subr.mxu1 %v317_v14  ;;  %v815_v24 = vld [vmem:[#allocation3 + $0xe0] sm:$0xff]  ;;  %v880_v25 = vld [vmem:[#allocation3 + $0x2e8] sm:$0xff]  ;;  %v300_v26 = vld [vmem:[%s1879_s19 + $0x10] sm:$0xff] }
  0x26   : > { %432 = vmatpush1.msra.mxu0 %v314_v15  ;;  %593 = vmatpush1.msra.mxu1 %v316_v16  ;;  %v814_v27 = vld [vmem:[#allocation3 + $0xd8] sm:$0xff]  ;;  %v879_v28 = vld [vmem:[#allocation3 + $0x2e0] sm:$0xff]  ;;  %v813_v29 = vld [vmem:[#allocation3 + $0xd0] sm:$0xff] }
  0x27   : > { %1583 = vmatmul.mubr.msk.f32.vlgmr.msra.gmra.mxu0 %vm352_vm0, %v298_v17  ;;  %1599 = vmatmul.mubr.msk.f32.vlgmr.msra.gmra.mxu1 %vm352_vm0, %v298_v17  ;;  %v878_v30 = vld [vmem:[#allocation3 + $0x2d8] sm:$0xff]  ;;  %v812_v32 = vld [vmem:[#allocation3 + $0xc8] sm:$0xff]  ;;  %v877_v33 = vld [vmem:[#allocation3 + $0x2d0] sm:$0xff] }
  0x28   : > { %471 = vmatprep.mubr.f32.mxu0 %v1760_v0  ;;  %632 = vmatprep.mubr.f32.mxu1 %v1760_v0  ;;  %v301_v31 = vld [vmem:[%s1879_s19 + $0x18] sm:$0xff]  ;;  %v811_v34 = vld [vmem:[#allocation3 + $0xc0] sm:$0xff]  ;;  %v876_v35 = vld [vmem:[#allocation3 + $0x2c8] sm:$0xff] }
  0x29   : > { %927 = vmatprep.subr.mxu0 %v818_v19  ;;  %1088 = vmatprep.subr.mxu1 %v882_v21  ;;  %v302_v36 = vld [vmem:[%s1879_s19 + $0x20] sm:$0xff]  ;;  %v810_v37 = vld [vmem:[#allocation3 + $0xb8] sm:$0xff]  ;;  %v809_v39 = vld [vmem:[#allocation3 + $0xb0] sm:$0xff] }
  0x2a   : > { %928 = vmatpush1.msra.mxu0 %v817_v20  ;;  %1089 = vmatpush1.msra.mxu1 %v881_v23  ;;  %v875_v38 = vld [vmem:[#allocation3 + $0x2c0] sm:$0xff]  ;;  %v874_v40 = vld [vmem:[#allocation3 + $0x2b8] sm:$0xff]  ;;  %v303_v41 = vld [vmem:[%s1879_s19 + $0x28] sm:$0xff] }
  0x2b   : > { %1584 = vmatmul.mubr.msk.f32.gmra.mxu0 %vm352_vm0, %v299_v18  ;;  %1600 = vmatmul.mubr.msk.f32.gmra.mxu1 %vm352_vm0, %v299_v18  ;;  %v808_v42 = vld [vmem:[#allocation3 + $0xa8] sm:$0xff]  ;;  %v873_v43 = vld [vmem:[#allocation3 + $0x2b0] sm:$0xff]  ;;  %v807_v44 = vld [vmem:[#allocation3 + $0xa0] sm:$0xff] }
  0x2c   : > { %477 = vmatprep.mubr.f32.mxu0 %v1760_v0  ;;  %638 = vmatprep.mubr.f32.mxu1 %v1760_v0  ;;  %v872_v45 = vld [vmem:[#allocation3 + $0x2a8] sm:$0xff]  ;;  %v304_v46 = vld [vmem:[%s1879_s19 + $0x30] sm:$0xff]  ;;  %v806_v47 = vld [vmem:[#allocation3 + $0x98] sm:$0xff] }
  0x2d   : > { %929 = vmatprep.subr.mxu0 %v816_v22  ;;  %1090 = vmatprep.subr.mxu1 %v880_v25  ;;  %v871_v48 = vld [vmem:[#allocation3 + $0x2a0] sm:$0xff]  ;;  %v805_v49 = vld [vmem:[#allocation3 + $0x90] sm:$0xff]  ;;  %v870_v50 = vld [vmem:[#allocation3 + $0x298] sm:$0xff] }
  0x2e   : > { %930 = vmatpush1.msra.mxu0 %v815_v24  ;;  %1091 = vmatpush1.msra.mxu1 %v879_v28  ;;  %v305_v51 = vld [vmem:[%s1879_s19 + $0x38] sm:$0xff]  ;;  %v804_v52 = vld [vmem:[#allocation3 + $0x88] sm:$0xff]  ;;  %v869_v53 = vld [vmem:[#allocation3 + $0x290] sm:$0xff] }
  0x2f   : > { %1585 = vmatmul.mubr.msk.f32.gmra.mxu0 %vm352_vm0, %v300_v26  ;;  %1601 = vmatmul.mubr.msk.f32.gmra.mxu1 %vm352_vm0, %v300_v26  ;;  %v803_v54 = vld [vmem:[#allocation3 + $0x80] sm:$0xff]  ;;  %v868_v55 = vld [vmem:[#allocation3 + $0x288] sm:$0xff]  ;;  %v802_v57 = vld [vmem:[#allocation3 + $0x78] sm:$0xff] }
  0x30   : > { %483 = vmatprep.mubr.f32.mxu0 %v1760_v0  ;;  %644 = vmatprep.mubr.f32.mxu1 %v1760_v0  ;;  %v306_v56 = vld [vmem:[%s1879_s19 + $0x40] sm:$0xff]  ;;  %v801_v59 = vld [vmem:[#allocation3 + $0x70] sm:$0xff]  ;;  %v866_v60 = vld [vmem:[#allocation3 + $0x278] sm:$0xff] }
  0x31   : > { %931 = vmatprep.subr.mxu0 %v814_v27  ;;  %1092 = vmatprep.subr.mxu1 %v878_v30  ;;  %v867_v58 = vld [vmem:[#allocation3 + $0x280] sm:$0xff]  ;;  %v307_v61 = vld [vmem:[%s1879_s19 + $0x48] sm:$0xff]  ;;  %v865_v63 = vld [vmem:[#allocation3 + $0x270] sm:$0xff] }
  0x32   : > { %932 = vmatpush1.msra.mxu0 %v813_v29  ;;  %1093 = vmatpush1.msra.mxu1 %v877_v33  ;;  %v800_v62 = vld [vmem:[#allocation3 + $0x68] sm:$0xff]  ;;  %v799_v1 = vld [vmem:[#allocation3 + $0x60] sm:$0xff]  ;;  %v308_v3 = vld [vmem:[%s1879_s19 + $0x50] sm:$0xff] }
  0x33   : > { %1586 = vmatmul.mubr.msk.f32.gmra.mxu0 %vm352_vm0, %v301_v31  ;;  %1602 = vmatmul.mubr.msk.f32.gmra.mxu1 %vm352_vm0, %v301_v31  ;;  %v864_v2 = vld [vmem:[#allocation3 + $0x268] sm:$0xff]  ;;  %v798_v4 = vld [vmem:[#allocation3 + $0x58] sm:$0xff]  ;;  %v863_v5 = vld [vmem:[#allocation3 + $0x260] sm:$0xff] }
  0x34   : > { %489 = vmatprep.mubr.f32.mxu0 %v1760_v0  ;;  %650 = vmatprep.mubr.f32.mxu1 %v1760_v0  ;;  %v797_v6 = vld [vmem:[#allocation3 + $0x50] sm:$0xff]  ;;  %v862_v7 = vld [vmem:[#allocation3 + $0x258] sm:$0xff]  ;;  %v796_v9 = vld [vmem:[#allocation3 + $0x48] sm:$0xff] }
  0x35   : > { %933 = vmatprep.subr.mxu0 %v812_v32  ;;  %1094 = vmatprep.subr.mxu1 %v876_v35  ;;  %v309_v8 = vld [vmem:[%s1879_s19 + $0x58] sm:$0xff]  ;;  %v861_v10 = vld [vmem:[#allocation3 + $0x250] sm:$0xff]  ;;  %v795_v11 = vld [vmem:[#allocation3 + $0x40] sm:$0xff] }
  0x36   : > { %934 = vmatpush1.msra.mxu0 %v811_v34  ;;  %1095 = vmatpush1.msra.mxu1 %v875_v38  ;;  %v860_v12 = vld [vmem:[#allocation3 + $0x248] sm:$0xff]  ;;  %v310_v13 = vld [vmem:[%s1879_s19 + $0x60] sm:$0xff]  ;;  %v794_v14 = vld [vmem:[#allocation3 + $0x38] sm:$0xff] }
  0x37   : > { %1587 = vmatmul.mubr.msk.f32.gmra.mxu0 %vm352_vm0, %v302_v36  ;;  %1603 = vmatmul.mubr.msk.f32.gmra.mxu1 %vm352_vm0, %v302_v36  ;;  %v859_v15 = vld [vmem:[#allocation3 + $0x240] sm:$0xff]  ;;  %v793_v16 = vld [vmem:[#allocation3 + $0x30] sm:$0xff]  ;;  %v858_v17 = vld [vmem:[#allocation3 + $0x238] sm:$0xff] }
  0x38   : > { %495 = vmatprep.mubr.f32.mxu0 %v1760_v0  ;;  %656 = vmatprep.mubr.f32.mxu1 %v1760_v0  ;;  %v311_v18 = vld [vmem:[%s1879_s19 + $0x68] sm:$0xff]  ;;  %v857_v20 = vld [vmem:[#allocation3 + $0x230] sm:$0xff]  ;;  %v791_v21 = vld [vmem:[#allocation3 + $0x20] sm:$0xff] }
  0x39   : > { %935 = vmatprep.subr.mxu0 %v810_v37  ;;  %1096 = vmatprep.subr.mxu1 %v874_v40  ;;  %v792_v19 = vld [vmem:[#allocation3 + $0x28] sm:$0xff]  ;;  %v312_v23 = vld [vmem:[%s1879_s19 + $0x70] sm:$0xff]  ;;  %v790_v24 = vld [vmem:[#allocation3 + $0x18] sm:$0xff] }
  0x3a   : > { %936 = vmatpush1.msra.mxu0 %v809_v39  ;;  %1097 = vmatpush1.msra.mxu1 %v873_v43  ;;  %v856_v22 = vld [vmem:[#allocation3 + $0x228] sm:$0xff]  ;;  %v855_v25 = vld [vmem:[#allocation3 + $0x220] sm:$0xff]  ;;  %v789_v26 = vld [vmem:[#allocation3 + $0x10] sm:$0xff] }
  0x3b   : > { %1588 = vmatmul.mubr.msk.f32.gmra.mxu0 %vm352_vm0, %v303_v41  ;;  %1604 = vmatmul.mubr.msk.f32.gmra.mxu1 %vm352_vm0, %v303_v41  ;;  %v854_v27 = vld [vmem:[#allocation3 + $0x218] sm:$0xff]  ;;  %v788_v29 = vld [vmem:[#allocation3 + $0x8] sm:$0xff]  ;;  %v853_v30 = vld [vmem:[#allocation3 + $0x210] sm:$0xff] }
  0x3c   : > { %501 = vmatprep.mubr.f32.mxu0 %v1760_v0  ;;  %662 = vmatprep.mubr.f32.mxu1 %v1760_v0  ;;  %v313_v28 = vld [vmem:[%s1879_s19 + $0x78] sm:$0xff]  ;;  %v787_v31 = vld [vmem:[#allocation3] sm:$0xff]  ;;  %v852_v32 = vld [vmem:[#allocation3 + $0x208] sm:$0xff] }
  0x3d   : > { %937 = vmatprep.subr.mxu0 %v808_v42  ;;  %1098 = vmatprep.subr.mxu1 %v872_v45  ;;  %v850_v33 = vld [vmem:[#allocation3 + $0x1f8] sm:$0xff]  ;;  %v851_v34 = vld [vmem:[#allocation3 + $0x200] sm:$0xff]  ;;  %v849_v35 = vld [vmem:[#allocation3 + $0x1f0] sm:$0xff] }
  0x3e   : > { %938 = vmatpush1.msra.mxu0 %v807_v44  ;;  %1099 = vmatpush1.msra.mxu1 %v871_v48  ;;  %v914_v36 = vld [vmem:[#allocation3 + $0x3f8] sm:$0xff]  ;;  %v913_v37 = vld [vmem:[#allocation3 + $0x3f0] sm:$0xff]  ;;  %v847_v38 = vld [vmem:[#allocation3 + $0x1e0] sm:$0xff] }
  0x3f   : > { %1589 = vmatmul.mubr.msk.f32.gmra.mxu0 %vm352_vm0, %v304_v46  ;;  %1605 = vmatmul.mubr.msk.f32.gmra.mxu1 %vm352_vm0, %v304_v46  ;;  %v912_v39 = vld [vmem:[#allocation3 + $0x3e8] sm:$0xff]  ;;  %v846_v40 = vld [vmem:[#allocation3 + $0x1d8] sm:$0xff]  ;;  %v911_v41 = vld [vmem:[#allocation3 + $0x3e0] sm:$0xff] }
  0x40   : > { %507 = vmatprep.mubr.f32.mxu0 %v1760_v0  ;;  %668 = vmatprep.mubr.f32.mxu1 %v1760_v0  ;;  %v845_v42 = vld [vmem:[#allocation3 + $0x1d0] sm:$0xff]  ;;  %v910_v43 = vld [vmem:[#allocation3 + $0x3d8] sm:$0xff]  ;;  %v844_v44 = vld [vmem:[#allocation3 + $0x1c8] sm:$0xff] }
  0x41   : > { %939 = vmatprep.subr.mxu0 %v806_v47  ;;  %1100 = vmatprep.subr.mxu1 %v870_v50  ;;  %v909_v45 = vld [vmem:[#allocation3 + $0x3d0] sm:$0xff]  ;;  %v843_v46 = vld [vmem:[#allocation3 + $0x1c0] sm:$0xff]  ;;  %v908_v47 = vld [vmem:[#allocation3 + $0x3c8] sm:$0xff] }
  0x42   : > { %940 = vmatpush1.msra.mxu0 %v805_v49  ;;  %1101 = vmatpush1.msra.mxu1 %v869_v53  ;;  %v842_v48 = vld [vmem:[#allocation3 + $0x1b8] sm:$0xff]  ;;  %v907_v49 = vld [vmem:[#allocation3 + $0x3c0] sm:$0xff]  ;;  %v841_v50 = vld [vmem:[#allocation3 + $0x1b0] sm:$0xff] }
  0x43   : > { %1590 = vmatmul.mubr.msk.f32.gmra.mxu0 %vm352_vm0, %v305_v51  ;;  %1606 = vmatmul.mubr.msk.f32.gmra.mxu1 %vm352_vm0, %v305_v51  ;;  %v906_v51 = vld [vmem:[#allocation3 + $0x3b8] sm:$0xff]  ;;  %v905_v53 = vld [vmem:[#allocation3 + $0x3b0] sm:$0xff] }
  0x44   : > { %513 = vmatprep.mubr.f32.mxu0 %v1760_v0  ;;  %674 = vmatprep.mubr.f32.mxu1 %v1760_v0 }
  0x45   : > { %941 = vmatprep.subr.mxu0 %v804_v52  ;;  %1102 = vmatprep.subr.mxu1 %v868_v55  ;;  %v840_v52 = vld [vmem:[#allocation3 + $0x1a8] sm:$0xff] }
  0x46   : > { %942 = vmatpush1.msra.mxu0 %v803_v54  ;;  %1103 = vmatpush1.msra.mxu1 %v867_v58  ;;  %v839_v54 = vld [vmem:[#allocation3 + $0x1a0] sm:$0xff]  ;;  %v904_v55 = vld [vmem:[#allocation3 + $0x3a8] sm:$0xff]  ;;  %v837_v58 = vld [vmem:[#allocation3 + $0x190] sm:$0xff] }
  0x47   : > { %1591 = vmatmul.mubr.msk.f32.gmra.mxu0 %vm352_vm0, %v306_v56  ;;  %1607 = vmatmul.mubr.msk.f32.gmra.mxu1 %vm352_vm0, %v306_v56  ;;  %v838_v56 = vld [vmem:[#allocation3 + $0x198] sm:$0xff] }
  0x48   : > { %519 = vmatprep.mubr.f32.mxu0 %v1760_v0  ;;  %680 = vmatprep.mubr.f32.mxu1 %v1760_v0 }
  0x49   : > { %943 = vmatprep.subr.mxu0 %v802_v57  ;;  %1104 = vmatprep.subr.mxu1 %v866_v60  ;;  %v903_v57 = vld [vmem:[#allocation3 + $0x3a0] sm:$0xff]  ;;  %v836_v60 = vld [vmem:[#allocation3 + $0x188] sm:$0xff] }
  0x4a   : > { %944 = vmatpush1.msra.mxu0 %v801_v59  ;;  %1105 = vmatpush1.msra.mxu1 %v865_v63  ;;  %v902_v59 = vld [vmem:[#allocation3 + $0x398] sm:$0xff]  ;;  %v900_v63 = vld [vmem:[#allocation3 + $0x388] sm:$0xff] }
  0x4b   : > { %1592 = vmatmul.mubr.msk.f32.gmra.mxu0 %vm352_vm0, %v307_v61  ;;  %1608 = vmatmul.mubr.msk.f32.gmra.mxu1 %vm352_vm0, %v307_v61  ;;  %v901_v61 = vld [vmem:[#allocation3 + $0x390] sm:$0xff] }
  0x4c   : > { %525 = vmatprep.mubr.f32.mxu0 %v1760_v0  ;;  %686 = vmatprep.mubr.f32.mxu1 %v1760_v0 }
  0x4d   : > { %945 = vmatprep.subr.mxu0 %v800_v62  ;;  %1106 = vmatprep.subr.mxu1 %v864_v2  ;;  %v835_v62 = vld [vmem:[#allocation3 + $0x180] sm:$0xff] }
  0x4e   : > { %946 = vmatpush1.msra.mxu0 %v799_v1  ;;  %1107 = vmatpush1.msra.mxu1 %v863_v5  ;;  %v834_v1 = vld [vmem:[#allocation3 + $0x178] sm:$0xff]  ;;  %v899_v2 = vld [vmem:[#allocation3 + $0x380] sm:$0xff]  ;;  %v832_v5 = vld [vmem:[#allocation3 + $0x168] sm:$0xff] }
  0x4f   : > { %1593 = vmatmul.mubr.msk.f32.gmra.mxu0 %vm352_vm0, %v308_v3  ;;  %1609 = vmatmul.mubr.msk.f32.gmra.mxu1 %vm352_vm0, %v308_v3  ;;  %v833_v3 = vld [vmem:[#allocation3 + $0x170] sm:$0xff] }
  0x50   : > { %531 = vmatprep.mubr.f32.mxu0 %v1760_v0  ;;  %692 = vmatprep.mubr.f32.mxu1 %v1760_v0 }
  0x51   : > { %947 = vmatprep.subr.mxu0 %v798_v4  ;;  %1108 = vmatprep.subr.mxu1 %v862_v7  ;;  %v898_v4 = vld [vmem:[#allocation3 + $0x378] sm:$0xff]  ;;  %v831_v7 = vld [vmem:[#allocation3 + $0x160] sm:$0xff] }
  0x52   : > { %948 = vmatpush1.msra.mxu0 %v797_v6  ;;  %1109 = vmatpush1.msra.mxu1 %v861_v10  ;;  %v897_v6 = vld [vmem:[#allocation3 + $0x370] sm:$0xff]  ;;  %v895_v10 = vld [vmem:[#allocation3 + $0x360] sm:$0xff] }
  0x53   : > { %1594 = vmatmul.mubr.msk.f32.gmra.mxu0 %vm352_vm0, %v309_v8  ;;  %1610 = vmatmul.mubr.msk.f32.gmra.mxu1 %vm352_vm0, %v309_v8  ;;  %v896_v8 = vld [vmem:[#allocation3 + $0x368] sm:$0xff] }
  0x54   : > { %537 = vmatprep.mubr.f32.mxu0 %v1760_v0  ;;  %698 = vmatprep.mubr.f32.mxu1 %v1760_v0 }
  0x55   : > { %949 = vmatprep.subr.mxu0 %v796_v9  ;;  %1110 = vmatprep.subr.mxu1 %v860_v12  ;;  %v830_v9 = vld [vmem:[#allocation3 + $0x158] sm:$0xff] }
  0x56   : > { %950 = vmatpush1.msra.mxu0 %v795_v11  ;;  %1111 = vmatpush1.msra.mxu1 %v859_v15  ;;  %v829_v11 = vld [vmem:[#allocation3 + $0x150] sm:$0xff]  ;;  %v894_v12 = vld [vmem:[#allocation3 + $0x358] sm:$0xff]  ;;  %v827_v15 = vld [vmem:[#allocation3 + $0x140] sm:$0xff] }
  0x57   : > { %1595 = vmatmul.mubr.msk.f32.gmra.mxu0 %vm352_vm0, %v310_v13  ;;  %1611 = vmatmul.mubr.msk.f32.gmra.mxu1 %vm352_vm0, %v310_v13  ;;  %v828_v13 = vld [vmem:[#allocation3 + $0x148] sm:$0xff] }
  0x58   : > { %543 = vmatprep.mubr.f32.mxu0 %v1760_v0  ;;  %704 = vmatprep.mubr.f32.mxu1 %v1760_v0 }
  0x59   : > { %951 = vmatprep.subr.mxu0 %v794_v14  ;;  %1112 = vmatprep.subr.mxu1 %v858_v17  ;;  %v893_v14 = vld [vmem:[#allocation3 + $0x350] sm:$0xff]  ;;  %v826_v17 = vld [vmem:[#allocation3 + $0x138] sm:$0xff] }
  0x5a   : > { %952 = vmatpush1.msra.mxu0 %v793_v16  ;;  %1113 = vmatpush1.msra.mxu1 %v857_v20  ;;  %v892_v16 = vld [vmem:[#allocation3 + $0x348] sm:$0xff]  ;;  %v890_v20 = vld [vmem:[#allocation3 + $0x338] sm:$0xff] }
  0x5b   : > { %1596 = vmatmul.mubr.msk.f32.gmra.mxu0 %vm352_vm0, %v311_v18  ;;  %1612 = vmatmul.mubr.msk.f32.gmra.mxu1 %vm352_vm0, %v311_v18  ;;  %v891_v18 = vld [vmem:[#allocation3 + $0x340] sm:$0xff] }
  0x5c   : > { %549 = vmatprep.mubr.f32.mxu0 %v1760_v0  ;;  %710 = vmatprep.mubr.f32.mxu1 %v1760_v0 }
  0x5d   : > { %953 = vmatprep.subr.mxu0 %v792_v19  ;;  %1114 = vmatprep.subr.mxu1 %v856_v22  ;;  %v825_v19 = vld [vmem:[#allocation3 + $0x130] sm:$0xff] }
  0x5e   : > { %954 = vmatpush1.msra.mxu0 %v791_v21  ;;  %1115 = vmatpush1.msra.mxu1 %v855_v25  ;;  %v824_v21 = vld [vmem:[#allocation3 + $0x128] sm:$0xff]  ;;  %v889_v22 = vld [vmem:[#allocation3 + $0x330] sm:$0xff]  ;;  %v822_v25 = vld [vmem:[#allocation3 + $0x118] sm:$0xff] }
  0x5f   : > { %1597 = vmatmul.mubr.msk.f32.gmra.mxu0 %vm352_vm0, %v312_v23  ;;  %1613 = vmatmul.mubr.msk.f32.gmra.mxu1 %vm352_vm0, %v312_v23  ;;  %v823_v23 = vld [vmem:[#allocation3 + $0x120] sm:$0xff] }
  0x60   : > { %555 = vmatprep.mubr.f32.mxu0 %v1760_v0  ;;  %716 = vmatprep.mubr.f32.mxu1 %v1760_v0  ;;  %v848_v0 = vld [vmem:[#allocation3 + $0x1e8] sm:$0xff] }
  0x61   : > { %955 = vmatprep.subr.mxu0 %v790_v24  ;;  %1116 = vmatprep.subr.mxu1 %v854_v27  ;;  %v888_v24 = vld [vmem:[#allocation3 + $0x328] sm:$0xff]  ;;  %v821_v27 = vld [vmem:[#allocation3 + $0x110] sm:$0xff] }
  0x62   : > { %956 = vmatpush1.msra.mxu0 %v789_v26  ;;  %1117 = vmatpush1.msra.mxu1 %v853_v30  ;;  %v887_v26 = vld [vmem:[#allocation3 + $0x320] sm:$0xff]  ;;  %v885_v30 = vld [vmem:[#allocation3 + $0x310] sm:$0xff] }
  0x63   : > { %1598 = vmatmul.mubr.msk.f32.gmra.mxu0 %vm352_vm0, %v313_v28  ;;  %1614 = vmatmul.mubr.msk.f32.gmra.mxu1 %vm352_vm0, %v313_v28  ;;  %v886_v28 = vld [vmem:[#allocation3 + $0x318] sm:$0xff] }
  0x64   : > { %957 = vmatprep.subr.mxu0 %v788_v29  ;;  %1118 = vmatprep.subr.mxu1 %v852_v32  ;;  %v820_v29 = vld [vmem:[#allocation3 + $0x108] sm:$0xff] }
  0x65   : > { %958 = vmatpush1.msra.mxu0 %v787_v31  ;;  %1119 = vmatpush1.msra.mxu1 %v851_v34  ;;  %v819_v31 = vld [vmem:[#allocation3 + $0x100] sm:$0xff]  ;;  %v884_v32 = vld [vmem:[#allocation3 + $0x308] sm:$0xff]  ;;  %v332_v34 = vlaneseq }
  0x66   : > { %959 = vmatprep.subr.mxu0 %v850_v33  ;;  %1120 = vmatprep.subr.mxu1 %v914_v36  ;;  %v883_v33 = vld [vmem:[#allocation3 + $0x300] sm:$0xff] }
  0x67   : > { %960 = vmatpush2.msra.mxu0 %v849_v35  ;;  %1121 = vmatpush2.msra.mxu1 %v913_v37  ;;  %v333_v35 = vshrl.u32 %v332_v34, 7  ;;  %v330_v37 = vld [vmem:[%s2196_s2] sm:$0xf] }
  0x68   : > { %961 = vmatprep.subr.mxu0 %v848_v0  ;;  %1122 = vmatprep.subr.mxu1 %v912_v39 }
  0x69   : > { %962 = vmatpush2.msra.mxu0 %v847_v38  ;;  %1123 = vmatpush2.msra.mxu1 %v911_v41  ;;  %v342_v36 = vsub.s32 2, %v333_v35  ;;  %v1971_v0 = vsub.s32 0, %v333_v35  ;;  %v1976_v38 = vsub.s32 1, %v333_v35  ;;  %v346_v39 = vsub.s32 3, %v333_v35 }
  0x6a   : > { %963 = vmatprep.subr.mxu0 %v846_v40  ;;  %1124 = vmatprep.subr.mxu1 %v910_v43 }
  0x6b   : > { %964 = vmatpush2.msra.mxu0 %v845_v42  ;;  %1125 = vmatpush2.msra.mxu1 %v909_v45  ;;  %v1978_v40 = vrot.slane %v330_v37, %v342_v36  ;;  %v1981_v41 = vrot.slane %v330_v37, %v1971_v0  ;;  %v1984_v42 = vrot.slane %v330_v37, %v1976_v38 }
  0x6c   : > { %965 = vmatprep.subr.mxu0 %v844_v44  ;;  %1126 = vmatprep.subr.mxu1 %v908_v47  ;;  %v1986_v43 = vrot.slane %v330_v37, %v346_v39 }
  0x6d   : > { %966 = vmatpush2.msra.mxu0 %v843_v46  ;;  %1127 = vmatpush2.msra.mxu1 %v907_v49 }
  0x6e   : > { %967 = vmatprep.subr.mxu0 %v842_v48  ;;  %1128 = vmatprep.subr.mxu1 %v906_v51 }
  0x6f   : > { %968 = vmatpush2.msra.mxu0 %v841_v50  ;;  %1129 = vmatpush2.msra.mxu1 %v905_v53 }
  0x70   : > { %969 = vmatprep.subr.mxu0 %v840_v52  ;;  %1130 = vmatprep.subr.mxu1 %v904_v55 }
  0x71   : > { %970 = vmatpush2.msra.mxu0 %v839_v54  ;;  %1131 = vmatpush2.msra.mxu1 %v903_v57 }
  0x72   : > { %971 = vmatprep.subr.mxu0 %v838_v56  ;;  %1132 = vmatprep.subr.mxu1 %v902_v59 }
  0x73   : > { %972 = vmatpush2.msra.mxu0 %v837_v58  ;;  %1133 = vmatpush2.msra.mxu1 %v901_v61 }
  0x74   : > { %973 = vmatprep.subr.mxu0 %v836_v60  ;;  %1134 = vmatprep.subr.mxu1 %v900_v63 }
  0x75   : > { %974 = vmatpush2.msra.mxu0 %v835_v62  ;;  %1135 = vmatpush2.msra.mxu1 %v899_v2 }
  0x76   : > { %975 = vmatprep.subr.mxu0 %v834_v1  ;;  %1136 = vmatprep.subr.mxu1 %v898_v4 }
  0x77   : > { %976 = vmatpush2.msra.mxu0 %v833_v3  ;;  %1137 = vmatpush2.msra.mxu1 %v897_v6 }
  0x78   : > { %977 = vmatprep.subr.mxu0 %v832_v5  ;;  %1138 = vmatprep.subr.mxu1 %v896_v8 }
  0x79   : > { %978 = vmatpush2.msra.mxu0 %v831_v7  ;;  %1139 = vmatpush2.msra.mxu1 %v895_v10 }
  0x7a   : > { %979 = vmatprep.subr.mxu0 %v830_v9  ;;  %1140 = vmatprep.subr.mxu1 %v894_v12 }
  0x7b   : > { %980 = vmatpush2.msra.mxu0 %v829_v11  ;;  %1141 = vmatpush2.msra.mxu1 %v893_v14 }
  0x7c   : > { %981 = vmatprep.subr.mxu0 %v828_v13  ;;  %1142 = vmatprep.subr.mxu1 %v892_v16 }
  0x7d   : > { %982 = vmatpush2.msra.mxu0 %v827_v15  ;;  %1143 = vmatpush2.msra.mxu1 %v891_v18 }
  0x7e   : > { %983 = vmatprep.subr.mxu0 %v826_v17  ;;  %1144 = vmatprep.subr.mxu1 %v890_v20 }
  0x7f   : > { %984 = vmatpush2.msra.mxu0 %v825_v19  ;;  %1145 = vmatpush2.msra.mxu1 %v889_v22 }
  0x80   : > { %985 = vmatprep.subr.mxu0 %v824_v21  ;;  %1146 = vmatprep.subr.mxu1 %v888_v24 }
  0x81   : > { %986 = vmatpush2.msra.mxu0 %v823_v23  ;;  %1147 = vmatpush2.msra.mxu1 %v887_v26 }
  0x82   : > { %987 = vmatprep.subr.mxu0 %v822_v25  ;;  %1148 = vmatprep.subr.mxu1 %v886_v28 }
  0x83   : > { %988 = vmatpush2.msra.mxu0 %v821_v27  ;;  %1149 = vmatpush2.msra.mxu1 %v885_v30 }
  0x84   : > { %989 = vmatprep.subr.mxu0 %v820_v29  ;;  %1150 = vmatprep.subr.mxu1 %v884_v32 }
  0x85   : > { %990 = vmatpush2.msra.mxu0 %v819_v31  ;;  %1151 = vmatpush2.msra.mxu1 %v883_v33 }
  0xe7   : > { %v467_v44 = vpop.f32.mrf.mxu0  ;;  %v628_v45 = vpop.f32.mrf.mxu1 }
  0xe8   : > { %v629_v46 = vadd.f32 %v628_v45, %v1978_v40  ;;  %v468_v47 = vadd.f32 %v467_v44, %v1981_v41 }
  0xe9   : > { %v469_v48 = vpop.f32.mrf.mxu0  ;;  %v630_v49 = vpop.f32.mrf.mxu1 }
  0xea   : > { %v470_v50 = vadd.f32 %v469_v48, %v1984_v42  ;;  %v631_v51 = vadd.f32 %v630_v49, %v1986_v43  ;;  %v725_v52 = vmax.f32 %v629_v46, 0.0  ;;  %v723_v58 = vmax.f32 %v468_v47, 0.0 }
  0xeb   : > { %v473_v53 = vpop.f32.mrf.mxu0  ;;  %v634_v54 = vpop.f32.mrf.mxu1 }
  0xec   : > { %v724_v55 = vmax.f32 %v470_v50, 0.0  ;;  %v726_v56 = vmax.f32 %v631_v51, 0.0  ;;  %v635_v57 = vadd.f32 %v634_v54, %v1978_v40  ;;  %v474_v59 = vadd.f32 %v473_v53, %v1981_v41 }
  0xed   : > { %v475_v60 = vpop.f32.mrf.mxu0  ;;  %v636_v61 = vpop.f32.mrf.mxu1 }
  0xee   : > { %v476_v62 = vadd.f32 %v475_v60, %v1984_v42  ;;  %v637_v63 = vadd.f32 %v636_v61, %v1986_v43  ;;  %991 = vmatprep.mubr.f32.mxu0 %v724_v55  ;;  %1152 = vmatprep.mubr.f32.mxu1 %v726_v56  ;;  %v729_v1 = vmax.f32 %v635_v57, 0.0  ;;  %v727_v7 = vmax.f32 %v474_v59, 0.0 }
  0xef   : > { %v479_v2 = vpop.f32.mrf.mxu0  ;;  %v640_v3 = vpop.f32.mrf.mxu1  ;;  %992 = vmatmul.mubr.f32.vlgmr.msra.gmra.mxu0 %v723_v58  ;;  %1153 = vmatmul.mubr.f32.vlgmr.msra.gmra.mxu1 %v725_v52 }
  0xf0   : > { %v728_v4 = vmax.f32 %v476_v62, 0.0  ;;  %v730_v5 = vmax.f32 %v637_v63, 0.0  ;;  %v641_v6 = vadd.f32 %v640_v3, %v1978_v40  ;;  %v480_v8 = vadd.f32 %v479_v2, %v1981_v41 }
  0xf1   : > { %v481_v9 = vpop.f32.mrf.mxu0  ;;  %v642_v10 = vpop.f32.mrf.mxu1 }
  0xf2   : > { %v482_v11 = vadd.f32 %v481_v9, %v1984_v42  ;;  %v643_v12 = vadd.f32 %v642_v10, %v1986_v43  ;;  %997 = vmatprep.mubr.f32.mxu0 %v728_v4  ;;  %1158 = vmatprep.mubr.f32.mxu1 %v730_v5  ;;  %v733_v13 = vmax.f32 %v641_v6, 0.0  ;;  %v731_v19 = vmax.f32 %v480_v8, 0.0 }
  0xf3   : > { %v485_v14 = vpop.f32.mrf.mxu0  ;;  %v646_v15 = vpop.f32.mrf.mxu1  ;;  %998 = vmatmul.mubr.f32.gmra.mxu0 %v727_v7  ;;  %1159 = vmatmul.mubr.f32.gmra.mxu1 %v729_v1 }
  0xf4   : > { %v732_v16 = vmax.f32 %v482_v11, 0.0  ;;  %v734_v17 = vmax.f32 %v643_v12, 0.0  ;;  %v647_v18 = vadd.f32 %v646_v15, %v1978_v40  ;;  %v486_v20 = vadd.f32 %v485_v14, %v1981_v41 }
  0xf5   : > { %v487_v21 = vpop.f32.mrf.mxu0  ;;  %v648_v22 = vpop.f32.mrf.mxu1 }
  0xf6   : > { %v488_v23 = vadd.f32 %v487_v21, %v1984_v42  ;;  %v649_v24 = vadd.f32 %v648_v22, %v1986_v43  ;;  %1003 = vmatprep.mubr.f32.mxu0 %v732_v16  ;;  %1164 = vmatprep.mubr.f32.mxu1 %v734_v17  ;;  %v737_v25 = vmax.f32 %v647_v18, 0.0  ;;  %v735_v31 = vmax.f32 %v486_v20, 0.0 }
  0xf7   : > { %v491_v26 = vpop.f32.mrf.mxu0  ;;  %v652_v27 = vpop.f32.mrf.mxu1  ;;  %1004 = vmatmul.mubr.f32.gmra.mxu0 %v731_v19  ;;  %1165 = vmatmul.mubr.f32.gmra.mxu1 %v733_v13 }
  0xf8   : > { %v736_v28 = vmax.f32 %v488_v23, 0.0  ;;  %v738_v29 = vmax.f32 %v649_v24, 0.0  ;;  %v653_v30 = vadd.f32 %v652_v27, %v1978_v40  ;;  %v492_v32 = vadd.f32 %v491_v26, %v1981_v41 }
  0xf9   : > { %v493_v33 = vpop.f32.mrf.mxu0  ;;  %v654_v34 = vpop.f32.mrf.mxu1 }
  0xfa   : > { %v494_v35 = vadd.f32 %v493_v33, %v1984_v42  ;;  %v655_v36 = vadd.f32 %v654_v34, %v1986_v43  ;;  %1009 = vmatprep.mubr.f32.mxu0 %v736_v28  ;;  %1170 = vmatprep.mubr.f32.mxu1 %v738_v29  ;;  %v741_v37 = vmax.f32 %v653_v30, 0.0  ;;  %v739_v48 = vmax.f32 %v492_v32, 0.0 }
  0xfb   : > { %v497_v39 = vpop.f32.mrf.mxu0  ;;  %v658_v44 = vpop.f32.mrf.mxu1  ;;  %1010 = vmatmul.mubr.f32.gmra.mxu0 %v735_v31  ;;  %1171 = vmatmul.mubr.f32.gmra.mxu1 %v737_v25 }
  0xfc   : > { %v740_v45 = vmax.f32 %v494_v35, 0.0  ;;  %v742_v46 = vmax.f32 %v655_v36, 0.0  ;;  %v659_v47 = vadd.f32 %v658_v44, %v1978_v40  ;;  %v498_v49 = vadd.f32 %v497_v39, %v1981_v41 }
  0xfd   : > { %v499_v50 = vpop.f32.mrf.mxu0  ;;  %v660_v51 = vpop.f32.mrf.mxu1 }
  0xfe   : > { %v500_v52 = vadd.f32 %v499_v50, %v1984_v42  ;;  %v661_v53 = vadd.f32 %v660_v51, %v1986_v43  ;;  %1015 = vmatprep.mubr.f32.mxu0 %v740_v45  ;;  %1176 = vmatprep.mubr.f32.mxu1 %v742_v46  ;;  %v745_v54 = vmax.f32 %v659_v47, 0.0  ;;  %v743_v60 = vmax.f32 %v498_v49, 0.0 }
  0xff   : > { %v503_v55 = vpop.f32.mrf.mxu0  ;;  %v664_v56 = vpop.f32.mrf.mxu1  ;;  %1016 = vmatmul.mubr.f32.gmra.mxu0 %v739_v48  ;;  %1177 = vmatmul.mubr.f32.gmra.mxu1 %v741_v37 }
 0x100   : > { %v744_v57 = vmax.f32 %v500_v52, 0.0  ;;  %v746_v58 = vmax.f32 %v661_v53, 0.0  ;;  %v665_v59 = vadd.f32 %v664_v56, %v1978_v40  ;;  %v504_v61 = vadd.f32 %v503_v55, %v1981_v41 }
 0x101   : > { %v505_v62 = vpop.f32.mrf.mxu0  ;;  %v666_v63 = vpop.f32.mrf.mxu1 }
 0x102   : > { %v506_v1 = vadd.f32 %v505_v62, %v1984_v42  ;;  %v667_v2 = vadd.f32 %v666_v63, %v1986_v43  ;;  %1021 = vmatprep.mubr.f32.mxu0 %v744_v57  ;;  %1182 = vmatprep.mubr.f32.mxu1 %v746_v58  ;;  %v749_v3 = vmax.f32 %v665_v59, 0.0  ;;  %v747_v9 = vmax.f32 %v504_v61, 0.0 }
 0x103   : > { %v509_v4 = vpop.f32.mrf.mxu0  ;;  %v670_v5 = vpop.f32.mrf.mxu1  ;;  %1022 = vmatmul.mubr.f32.gmra.mxu0 %v743_v60  ;;  %1183 = vmatmul.mubr.f32.gmra.mxu1 %v745_v54 }
 0x104   : > { %v748_v6 = vmax.f32 %v506_v1, 0.0  ;;  %v750_v7 = vmax.f32 %v667_v2, 0.0  ;;  %v671_v8 = vadd.f32 %v670_v5, %v1978_v40  ;;  %v510_v10 = vadd.f32 %v509_v4, %v1981_v41 }
 0x105   : > { %v511_v11 = vpop.f32.mrf.mxu0  ;;  %v672_v12 = vpop.f32.mrf.mxu1 }
 0x106   : > { %v512_v13 = vadd.f32 %v511_v11, %v1984_v42  ;;  %v673_v14 = vadd.f32 %v672_v12, %v1986_v43  ;;  %1027 = vmatprep.mubr.f32.mxu0 %v748_v6  ;;  %1188 = vmatprep.mubr.f32.mxu1 %v750_v7  ;;  %v753_v15 = vmax.f32 %v671_v8, 0.0  ;;  %v751_v21 = vmax.f32 %v510_v10, 0.0 }
 0x107   : > { %v515_v16 = vpop.f32.mrf.mxu0  ;;  %v676_v17 = vpop.f32.mrf.mxu1  ;;  %1028 = vmatmul.mubr.f32.gmra.mxu0 %v747_v9  ;;  %1189 = vmatmul.mubr.f32.gmra.mxu1 %v749_v3 }
 0x108   : > { %v752_v18 = vmax.f32 %v512_v13, 0.0  ;;  %v754_v19 = vmax.f32 %v673_v14, 0.0  ;;  %v677_v20 = vadd.f32 %v676_v17, %v1978_v40  ;;  %v516_v22 = vadd.f32 %v515_v16, %v1981_v41 }
 0x109   : > { %v517_v23 = vpop.f32.mrf.mxu0  ;;  %v678_v24 = vpop.f32.mrf.mxu1 }
 0x10a   : > { %v518_v25 = vadd.f32 %v517_v23, %v1984_v42  ;;  %v679_v26 = vadd.f32 %v678_v24, %v1986_v43  ;;  %1033 = vmatprep.mubr.f32.mxu0 %v752_v18  ;;  %1194 = vmatprep.mubr.f32.mxu1 %v754_v19  ;;  %v757_v27 = vmax.f32 %v677_v20, 0.0  ;;  %v755_v33 = vmax.f32 %v516_v22, 0.0 }
 0x10b   : > { %v521_v28 = vpop.f32.mrf.mxu0  ;;  %v682_v29 = vpop.f32.mrf.mxu1  ;;  %1034 = vmatmul.mubr.f32.gmra.mxu0 %v751_v21  ;;  %1195 = vmatmul.mubr.f32.gmra.mxu1 %v753_v15 }
 0x10c   : > { %v756_v30 = vmax.f32 %v518_v25, 0.0  ;;  %v758_v31 = vmax.f32 %v679_v26, 0.0  ;;  %v683_v32 = vadd.f32 %v682_v29, %v1978_v40  ;;  %v522_v34 = vadd.f32 %v521_v28, %v1981_v41 }
 0x10d   : > { %v523_v35 = vpop.f32.mrf.mxu0  ;;  %v684_v36 = vpop.f32.mrf.mxu1 }
 0x10e   : > { %v524_v37 = vadd.f32 %v523_v35, %v1984_v42  ;;  %v685_v39 = vadd.f32 %v684_v36, %v1986_v43  ;;  %1039 = vmatprep.mubr.f32.mxu0 %v756_v30  ;;  %1200 = vmatprep.mubr.f32.mxu1 %v758_v31  ;;  %v761_v44 = vmax.f32 %v683_v32, 0.0  ;;  %v759_v50 = vmax.f32 %v522_v34, 0.0 }
 0x10f   : > { %v527_v45 = vpop.f32.mrf.mxu0  ;;  %v688_v46 = vpop.f32.mrf.mxu1  ;;  %1040 = vmatmul.mubr.f32.gmra.mxu0 %v755_v33  ;;  %1201 = vmatmul.mubr.f32.gmra.mxu1 %v757_v27 }
 0x110   : > { %v760_v47 = vmax.f32 %v524_v37, 0.0  ;;  %v762_v48 = vmax.f32 %v685_v39, 0.0  ;;  %v689_v49 = vadd.f32 %v688_v46, %v1978_v40  ;;  %v528_v51 = vadd.f32 %v527_v45, %v1981_v41 }
 0x111   : > { %v529_v52 = vpop.f32.mrf.mxu0  ;;  %v690_v53 = vpop.f32.mrf.mxu1 }
 0x112   : > { %v530_v54 = vadd.f32 %v529_v52, %v1984_v42  ;;  %v691_v55 = vadd.f32 %v690_v53, %v1986_v43  ;;  %1045 = vmatprep.mubr.f32.mxu0 %v760_v47  ;;  %1206 = vmatprep.mubr.f32.mxu1 %v762_v48  ;;  %v765_v56 = vmax.f32 %v689_v49, 0.0  ;;  %v763_v62 = vmax.f32 %v528_v51, 0.0 }
 0x113   : > { %v533_v57 = vpop.f32.mrf.mxu0  ;;  %v694_v58 = vpop.f32.mrf.mxu1  ;;  %1046 = vmatmul.mubr.f32.gmra.mxu0 %v759_v50  ;;  %1207 = vmatmul.mubr.f32.gmra.mxu1 %v761_v44 }
 0x114   : > { %v764_v59 = vmax.f32 %v530_v54, 0.0  ;;  %v766_v60 = vmax.f32 %v691_v55, 0.0  ;;  %v695_v61 = vadd.f32 %v694_v58, %v1978_v40  ;;  %v534_v63 = vadd.f32 %v533_v57, %v1981_v41 }
 0x115   : > { %v535_v1 = vpop.f32.mrf.mxu0  ;;  %v696_v2 = vpop.f32.mrf.mxu1 }
 0x116   : > { %v536_v3 = vadd.f32 %v535_v1, %v1984_v42  ;;  %v697_v4 = vadd.f32 %v696_v2, %v1986_v43  ;;  %1051 = vmatprep.mubr.f32.mxu0 %v764_v59  ;;  %1212 = vmatprep.mubr.f32.mxu1 %v766_v60  ;;  %v769_v5 = vmax.f32 %v695_v61, 0.0  ;;  %v767_v11 = vmax.f32 %v534_v63, 0.0 }
 0x117   : > { %v539_v6 = vpop.f32.mrf.mxu0  ;;  %v700_v7 = vpop.f32.mrf.mxu1  ;;  %1052 = vmatmul.mubr.f32.gmra.mxu0 %v763_v62  ;;  %1213 = vmatmul.mubr.f32.gmra.mxu1 %v765_v56 }
 0x118   : > { %v768_v8 = vmax.f32 %v536_v3, 0.0  ;;  %v770_v9 = vmax.f32 %v697_v4, 0.0  ;;  %v701_v10 = vadd.f32 %v700_v7, %v1978_v40  ;;  %v540_v12 = vadd.f32 %v539_v6, %v1981_v41 }
 0x119   : > { %v541_v13 = vpop.f32.mrf.mxu0  ;;  %v702_v14 = vpop.f32.mrf.mxu1 }
 0x11a   : > { %v542_v15 = vadd.f32 %v541_v13, %v1984_v42  ;;  %v703_v16 = vadd.f32 %v702_v14, %v1986_v43  ;;  %1057 = vmatprep.mubr.f32.mxu0 %v768_v8  ;;  %1218 = vmatprep.mubr.f32.mxu1 %v770_v9  ;;  %v773_v17 = vmax.f32 %v701_v10, 0.0  ;;  %v771_v23 = vmax.f32 %v540_v12, 0.0 }
 0x11b   : > { %v545_v18 = vpop.f32.mrf.mxu0  ;;  %v706_v19 = vpop.f32.mrf.mxu1  ;;  %1058 = vmatmul.mubr.f32.gmra.mxu0 %v767_v11  ;;  %1219 = vmatmul.mubr.f32.gmra.mxu1 %v769_v5  ;;  %v1281_v5 = vld [vmem:[%s2199_s5] sm:$0x3] }
 0x11c   : > { %v772_v20 = vmax.f32 %v542_v15, 0.0  ;;  %v774_v21 = vmax.f32 %v703_v16, 0.0  ;;  %v707_v22 = vadd.f32 %v706_v19, %v1978_v40  ;;  %v546_v24 = vadd.f32 %v545_v18, %v1981_v41 }
 0x11d   : > { %v547_v25 = vpop.f32.mrf.mxu0  ;;  %v708_v26 = vpop.f32.mrf.mxu1  ;;  %v2068_v10 = vrot.slane %v1281_v5, %v1976_v38  ;;  %v2071_v12 = vrot.slane %v1281_v5, %v1971_v0 }
 0x11e   : > { %v548_v27 = vadd.f32 %v547_v25, %v1984_v42  ;;  %v709_v28 = vadd.f32 %v708_v26, %v1986_v43  ;;  %1063 = vmatprep.mubr.f32.mxu0 %v772_v20  ;;  %1224 = vmatprep.mubr.f32.mxu1 %v774_v21  ;;  %v777_v29 = vmax.f32 %v707_v22, 0.0  ;;  %v775_v35 = vmax.f32 %v546_v24, 0.0 }
 0x11f   : > { %v551_v30 = vpop.f32.mrf.mxu0  ;;  %v712_v31 = vpop.f32.mrf.mxu1  ;;  %1064 = vmatmul.mubr.f32.gmra.mxu0 %v771_v23  ;;  %1225 = vmatmul.mubr.f32.gmra.mxu1 %v773_v17 }
 0x120   : > { %v776_v32 = vmax.f32 %v548_v27, 0.0  ;;  %v778_v33 = vmax.f32 %v709_v28, 0.0  ;;  %v713_v34 = vadd.f32 %v712_v31, %v1978_v40  ;;  %v552_v36 = vadd.f32 %v551_v30, %v1981_v41 }
 0x121   : > { %v553_v37 = vpop.f32.mrf.mxu0  ;;  %v714_v39 = vpop.f32.mrf.mxu1 }
 0x122   : > { %v554_v44 = vadd.f32 %v553_v37, %v1984_v42  ;;  %v715_v45 = vadd.f32 %v714_v39, %v1986_v43  ;;  %1069 = vmatprep.mubr.f32.mxu0 %v776_v32  ;;  %1230 = vmatprep.mubr.f32.mxu1 %v778_v33  ;;  %v781_v46 = vmax.f32 %v713_v34, 0.0  ;;  %v779_v52 = vmax.f32 %v552_v36, 0.0 }
 0x123   : > { %v557_v47 = vpop.f32.mrf.mxu0  ;;  %v718_v48 = vpop.f32.mrf.mxu1  ;;  %1070 = vmatmul.mubr.f32.gmra.mxu0 %v775_v35  ;;  %1231 = vmatmul.mubr.f32.gmra.mxu1 %v777_v29 }
 0x124   : > { %v780_v49 = vmax.f32 %v554_v44, 0.0  ;;  %v782_v50 = vmax.f32 %v715_v45, 0.0  ;;  %v719_v51 = vadd.f32 %v718_v48, %v1978_v40  ;;  %v558_v53 = vadd.f32 %v557_v47, %v1981_v41  ;;  %v915_v40 = vld [vmem:[%s2198_s4] sm:$0x3] }
 0x125   : > { %v559_v54 = vpop.f32.mrf.mxu0  ;;  %v720_v55 = vpop.f32.mrf.mxu1  ;;  %v2056_v41 = vrot.slane %v915_v40, %v1971_v0 }
 0x126   : > { %v560_v56 = vadd.f32 %v559_v54, %v1984_v42  ;;  %v721_v57 = vadd.f32 %v720_v55, %v1986_v43  ;;  %1075 = vmatprep.mubr.f32.mxu0 %v780_v49  ;;  %1236 = vmatprep.mubr.f32.mxu1 %v782_v50  ;;  %v785_v58 = vmax.f32 %v719_v51, 0.0  ;;  %v783_v61 = vmax.f32 %v558_v53, 0.0 }
 0x127   : > { %1076 = vmatmul.mubr.f32.gmra.mxu0 %v779_v52  ;;  %1237 = vmatmul.mubr.f32.gmra.mxu1 %v781_v46  ;;  %v2059_v42 = vrot.slane %v915_v40, %v1976_v38 }
 0x128   : > { %v784_v59 = vmax.f32 %v560_v56, 0.0  ;;  %v786_v60 = vmax.f32 %v721_v57, 0.0 }
 0x12a   : > { %1081 = vmatprep.mubr.f32.mxu0 %v784_v59  ;;  %1242 = vmatprep.mubr.f32.mxu1 %v786_v60 }
 0x12b   : > { %1082 = vmatmul.mubr.f32.gmra.mxu0 %v783_v61  ;;  %1243 = vmatmul.mubr.f32.gmra.mxu1 %v785_v58 }
 0x1af   : > { %v993_v43 = vpop.f32.mrf.mxu0  ;;  %v1154_v62 = vpop.f32.mrf.mxu1 }
 0x1b0   : > { %v994_v63 = vadd.f32 %v993_v43, %v2056_v41 }
 0x1b1   : > { %v995_v1 = vpop.f32.mrf.mxu0  ;;  %v1156_v2 = vpop.f32.mrf.mxu1 }
 0x1b2   : > { %v1155_v3 = vadd.f32 %v1154_v62, %v994_v63  ;;  %v996_v4 = vadd.f32 %v995_v1, %v2059_v42 }
 0x1b3   : > { %v999_v6 = vpop.f32.mrf.mxu0  ;;  %v1160_v7 = vpop.f32.mrf.mxu1 }
 0x1b4   : > { %v1157_v8 = vadd.f32 %v1156_v2, %v996_v4  ;;  %v1000_v9 = vadd.f32 %v999_v6, %v2056_v41  ;;  %v1249_v11 = vmax.f32 %v1155_v3, 0.0 }
 0x1b5   : > { %v1001_v13 = vpop.f32.mrf.mxu0  ;;  %v1162_v14 = vpop.f32.mrf.mxu1 }
 0x1b6   : > { %v1250_v15 = vmax.f32 %v1157_v8, 0.0  ;;  %v1161_v16 = vadd.f32 %v1160_v7, %v1000_v9  ;;  %v1002_v17 = vadd.f32 %v1001_v13, %v2059_v42  ;;  %v1293_v25 = vmul.f32 %v2071_v12, %v1249_v11 }
 0x1b7   : > { %v1005_v18 = vpop.f32.mrf.mxu0  ;;  %v1166_v19 = vpop.f32.mrf.mxu1 }
 0x1b8   : > { %v1251_v20 = vmax.f32 %v1161_v16, 0.0  ;;  %v1163_v21 = vadd.f32 %v1162_v14, %v1002_v17  ;;  %v1006_v22 = vadd.f32 %v1005_v18, %v2056_v41  ;;  %v1294_v23 = vmul.f32 %v2068_v10, %v1250_v15 }
 0x1b9   : > { %v1007_v38 = vpop.f32.mrf.mxu0  ;;  %v1168_v24 = vpop.f32.mrf.mxu1 }
 0x1ba   : > { %v1252_v0 = vmax.f32 %v1163_v21, 0.0  ;;  %v1167_v26 = vadd.f32 %v1166_v19, %v1006_v22  ;;  %v1008_v27 = vadd.f32 %v1007_v38, %v2059_v42  ;;  %v1325_v30 = vadd.f32 %v1294_v23, %v1293_v25 }
 0x1bb   : > { %v1011_v28 = vpop.f32.mrf.mxu0  ;;  %v1172_v29 = vpop.f32.mrf.mxu1  ;;  %v1295_v31 = vmul.f32 %v2071_v12, %v1251_v20 }
 0x1bc   : > { %v1296_v32 = vmul.f32 %v2068_v10, %v1252_v0  ;;  %v1169_v33 = vadd.f32 %v1168_v24, %v1008_v27  ;;  %v1012_v34 = vadd.f32 %v1011_v28, %v2056_v41  ;;  %v1253_v35 = vmax.f32 %v1167_v26, 0.0  ;;  %1326 = vadd.xlane.f32.xlu0 %v1325_v30 }
 0x1bd   : > { %v1013_v36 = vpop.f32.mrf.mxu0  ;;  %v1174_v37 = vpop.f32.mrf.mxu1 }
 0x1be   : > { %v1254_v39 = vmax.f32 %v1169_v33, 0.0  ;;  %v1173_v44 = vadd.f32 %v1172_v29, %v1012_v34  ;;  %v1014_v45 = vadd.f32 %v1013_v36, %v2059_v42  ;;  %v1328_v46 = vadd.f32 %v1296_v32, %v1295_v31 }
 0x1bf   : > { %v1017_v47 = vpop.f32.mrf.mxu0  ;;  %v1178_v48 = vpop.f32.mrf.mxu1  ;;  %v1297_v55 = vmul.f32 %v2071_v12, %v1253_v35 }
 0x1c0   : > { %v1175_v49 = vadd.f32 %v1174_v37, %v1014_v45  ;;  %v1018_v50 = vadd.f32 %v1017_v47, %v2056_v41  ;;  %v1298_v51 = vmul.f32 %v2068_v10, %v1254_v39  ;;  %v1255_v52 = vmax.f32 %v1173_v44, 0.0  ;;  %1329 = vadd.xlane.f32.xlu0 %v1328_v46 }
 0x1c1   : > { %v1019_v53 = vpop.f32.mrf.mxu0  ;;  %v1180_v54 = vpop.f32.mrf.mxu1 }
 0x1c2   : > { %v1256_v56 = vmax.f32 %v1175_v49, 0.0  ;;  %v1179_v57 = vadd.f32 %v1178_v48, %v1018_v50  ;;  %v1020_v58 = vadd.f32 %v1019_v53, %v2059_v42  ;;  %v1331_v61 = vadd.f32 %v1298_v51, %v1297_v55 }
 0x1c3   : > { %v1023_v59 = vpop.f32.mrf.mxu0  ;;  %v1184_v60 = vpop.f32.mrf.mxu1  ;;  %v1299_v63 = vmul.f32 %v2071_v12, %v1255_v52 }
 0x1c4   : > { %v1300_v40 = vmul.f32 %v2068_v10, %v1256_v56  ;;  %v1181_v43 = vadd.f32 %v1180_v54, %v1020_v58  ;;  %v1024_v62 = vadd.f32 %v1023_v59, %v2056_v41  ;;  %v1257_v1 = vmax.f32 %v1179_v57, 0.0  ;;  %1332 = vadd.xlane.f32.xlu1 %v1331_v61 }
 0x1c5   : > { %v1025_v2 = vpop.f32.mrf.mxu0  ;;  %v1186_v3 = vpop.f32.mrf.mxu1 }
 0x1c6   : > { %v1258_v4 = vmax.f32 %v1181_v43, 0.0  ;;  %v1185_v5 = vadd.f32 %v1184_v60, %v1024_v62  ;;  %v1026_v6 = vadd.f32 %v1025_v2, %v2059_v42  ;;  %v1334_v9 = vadd.f32 %v1300_v40, %v1299_v63 }
 0x1c7   : > { %v1029_v7 = vpop.f32.mrf.mxu0  ;;  %v1190_v8 = vpop.f32.mrf.mxu1  ;;  %v1301_v15 = vmul.f32 %v2071_v12, %v1257_v1 }
 0x1c8   : > { %v1302_v11 = vmul.f32 %v2068_v10, %v1258_v4  ;;  %v1187_v13 = vadd.f32 %v1186_v3, %v1026_v6  ;;  %v1030_v14 = vadd.f32 %v1029_v7, %v2056_v41  ;;  %v1259_v16 = vmax.f32 %v1185_v5, 0.0  ;;  %1335 = vadd.xlane.f32.xlu1 %v1334_v9 }
 0x1c9   : > { %v1031_v17 = vpop.f32.mrf.mxu0  ;;  %v1192_v18 = vpop.f32.mrf.mxu1 }
 0x1ca   : > { %v1260_v19 = vmax.f32 %v1187_v13, 0.0  ;;  %v1191_v20 = vadd.f32 %v1190_v8, %v1030_v14  ;;  %v1032_v21 = vadd.f32 %v1031_v17, %v2059_v42  ;;  %v1337_v38 = vadd.f32 %v1302_v11, %v1301_v15 }
 0x1cb   : > { %v1035_v22 = vpop.f32.mrf.mxu0  ;;  %v1196_v23 = vpop.f32.mrf.mxu1  ;;  %v1303_v26 = vmul.f32 %v2071_v12, %v1259_v16 }
 0x1cc   : > { %v1304_v24 = vmul.f32 %v2068_v10, %v1260_v19  ;;  %v1193_v25 = vadd.f32 %v1192_v18, %v1032_v21  ;;  %v1036_v0 = vadd.f32 %v1035_v22, %v2056_v41  ;;  %v1261_v27 = vmax.f32 %v1191_v20, 0.0  ;;  %1338 = vadd.xlane.f32.xlu0 %v1337_v38 }
 0x1cd   : > { %v1037_v28 = vpop.f32.mrf.mxu0  ;;  %v1198_v29 = vpop.f32.mrf.mxu1 }
 0x1ce   : > { %v1262_v30 = vmax.f32 %v1193_v25, 0.0  ;;  %v1197_v31 = vadd.f32 %v1196_v23, %v1036_v0  ;;  %v1038_v32 = vadd.f32 %v1037_v28, %v2059_v42  ;;  %v1340_v35 = vadd.f32 %v1304_v24, %v1303_v26 }
 0x1cf   : > { %v1041_v33 = vpop.f32.mrf.mxu0  ;;  %v1202_v34 = vpop.f32.mrf.mxu1  ;;  %v1305_v44 = vmul.f32 %v2071_v12, %v1261_v27 }
 0x1d0   : > { %v1306_v36 = vmul.f32 %v2068_v10, %v1262_v30  ;;  %v1199_v37 = vadd.f32 %v1198_v29, %v1038_v32  ;;  %v1042_v39 = vadd.f32 %v1041_v33, %v2056_v41  ;;  %v1263_v45 = vmax.f32 %v1197_v31, 0.0  ;;  %1341 = vadd.xlane.f32.xlu1 %v1340_v35 }
 0x1d1   : > { %v1043_v46 = vpop.f32.mrf.mxu0  ;;  %v1204_v47 = vpop.f32.mrf.mxu1 }
 0x1d2   : > { %v1264_v48 = vmax.f32 %v1199_v37, 0.0  ;;  %v1203_v49 = vadd.f32 %v1202_v34, %v1042_v39  ;;  %v1044_v50 = vadd.f32 %v1043_v46, %v2059_v42  ;;  %v1343_v53 = vadd.f32 %v1306_v36, %v1305_v44 }
 0x1d3   : > { %v1047_v51 = vpop.f32.mrf.mxu0  ;;  %v1208_v52 = vpop.f32.mrf.mxu1  ;;  %v1307_v57 = vmul.f32 %v2071_v12, %v1263_v45 }
 0x1d4   : > { %v1308_v54 = vmul.f32 %v2068_v10, %v1264_v48  ;;  %v1205_v55 = vadd.f32 %v1204_v47, %v1044_v50  ;;  %v1048_v56 = vadd.f32 %v1047_v51, %v2056_v41  ;;  %v1265_v58 = vmax.f32 %v1203_v49, 0.0  ;;  %1344 = vadd.xlane.f32.xlu0 %v1343_v53 }
 0x1d5   : > { %v1049_v59 = vpop.f32.mrf.mxu0  ;;  %v1210_v60 = vpop.f32.mrf.mxu1 }
 0x1d6   : > { %v1266_v61 = vmax.f32 %v1205_v55, 0.0  ;;  %v1209_v40 = vadd.f32 %v1208_v52, %v1048_v56  ;;  %v1050_v43 = vadd.f32 %v1049_v59, %v2059_v42  ;;  %v1346_v1 = vadd.f32 %v1308_v54, %v1307_v57 }
 0x1d7   : > { %v1053_v62 = vpop.f32.mrf.mxu0  ;;  %v1214_v63 = vpop.f32.mrf.mxu1  ;;  %v1309_v5 = vmul.f32 %v2071_v12, %v1265_v58 }
 0x1d8   : > { %v1310_v2 = vmul.f32 %v2068_v10, %v1266_v61  ;;  %v1211_v3 = vadd.f32 %v1210_v60, %v1050_v43  ;;  %v1054_v4 = vadd.f32 %v1053_v62, %v2056_v41  ;;  %v1267_v6 = vmax.f32 %v1209_v40, 0.0  ;;  %1347 = vadd.xlane.f32.xlu1 %v1346_v1 }
 0x1d9   : > { %v1055_v7 = vpop.f32.mrf.mxu0  ;;  %v1216_v8 = vpop.f32.mrf.mxu1 }
 0x1da   : > { %v1268_v9 = vmax.f32 %v1211_v3, 0.0  ;;  %v1215_v11 = vadd.f32 %v1214_v63, %v1054_v4  ;;  %v1056_v13 = vadd.f32 %v1055_v7, %v2059_v42  ;;  %v1349_v16 = vadd.f32 %v1310_v2, %v1309_v5 }
 0x1db   : > { %v1059_v14 = vpop.f32.mrf.mxu0  ;;  %v1220_v15 = vpop.f32.mrf.mxu1  ;;  %v1311_v20 = vmul.f32 %v2071_v12, %v1267_v6 }
 0x1dc   : > { %v1312_v17 = vmul.f32 %v2068_v10, %v1268_v9  ;;  %v1217_v18 = vadd.f32 %v1216_v8, %v1056_v13  ;;  %v1060_v19 = vadd.f32 %v1059_v14, %v2056_v41  ;;  %v1269_v21 = vmax.f32 %v1215_v11, 0.0  ;;  %1350 = vadd.xlane.f32.xlu0 %v1349_v16 }
 0x1dd   : > { %v1061_v22 = vpop.f32.mrf.mxu0  ;;  %v1222_v23 = vpop.f32.mrf.mxu1 }
 0x1de   : > { %v1270_v38 = vmax.f32 %v1217_v18, 0.0  ;;  %v1221_v24 = vadd.f32 %v1220_v15, %v1060_v19  ;;  %v1062_v25 = vadd.f32 %v1061_v22, %v2059_v42  ;;  %v1352_v27 = vadd.f32 %v1312_v17, %v1311_v20 }
 0x1df   : > { %v1065_v0 = vpop.f32.mrf.mxu0  ;;  %v1226_v26 = vpop.f32.mrf.mxu1  ;;  %v1313_v31 = vmul.f32 %v2071_v12, %v1269_v21 }
 0x1e0   : > { %v1314_v28 = vmul.f32 %v2068_v10, %v1270_v38  ;;  %v1223_v29 = vadd.f32 %v1222_v23, %v1062_v25  ;;  %v1066_v30 = vadd.f32 %v1065_v0, %v2056_v41  ;;  %v1271_v32 = vmax.f32 %v1221_v24, 0.0  ;;  %1353 = vadd.xlane.f32.xlu1 %v1352_v27 }
 0x1e1   : > { %v1067_v33 = vpop.f32.mrf.mxu0  ;;  %v1228_v34 = vpop.f32.mrf.mxu1 }
 0x1e2   : > { %v1272_v35 = vmax.f32 %v1223_v29, 0.0  ;;  %v1227_v36 = vadd.f32 %v1226_v26, %v1066_v30  ;;  %v1068_v37 = vadd.f32 %v1067_v33, %v2059_v42  ;;  %v1355_v45 = vadd.f32 %v1314_v28, %v1313_v31 }
 0x1e3   : > { %v1071_v39 = vpop.f32.mrf.mxu0  ;;  %v1232_v44 = vpop.f32.mrf.mxu1  ;;  %v1315_v49 = vmul.f32 %v2071_v12, %v1271_v32 }
 0x1e4   : > { %v1316_v46 = vmul.f32 %v2068_v10, %v1272_v35  ;;  %v1229_v47 = vadd.f32 %v1228_v34, %v1068_v37  ;;  %v1072_v48 = vadd.f32 %v1071_v39, %v2056_v41  ;;  %v1273_v50 = vmax.f32 %v1227_v36, 0.0  ;;  %1356 = vadd.xlane.f32.xlu0 %v1355_v45 }
 0x1e5   : > { %v1073_v51 = vpop.f32.mrf.mxu0  ;;  %v1234_v52 = vpop.f32.mrf.mxu1 }
 0x1e6   : > { %v1274_v53 = vmax.f32 %v1229_v47, 0.0  ;;  %v1233_v54 = vadd.f32 %v1232_v44, %v1072_v48  ;;  %v1074_v55 = vadd.f32 %v1073_v51, %v2059_v42  ;;  %v1358_v58 = vadd.f32 %v1316_v46, %v1315_v49 }
 0x1e7   : > { %v1077_v56 = vpop.f32.mrf.mxu0  ;;  %v1238_v57 = vpop.f32.mrf.mxu1  ;;  %v1317_v40 = vmul.f32 %v2071_v12, %v1273_v50 }
 0x1e8   : > { %v1318_v59 = vmul.f32 %v2068_v10, %v1274_v53  ;;  %v1235_v60 = vadd.f32 %v1234_v52, %v1074_v55  ;;  %v1078_v61 = vadd.f32 %v1077_v56, %v2056_v41  ;;  %v1275_v43 = vmax.f32 %v1233_v54, 0.0  ;;  %1359 = vadd.xlane.f32.xlu1 %v1358_v58 }
 0x1e9   : > { %v1079_v62 = vpop.f32.mrf.mxu0  ;;  %v1240_v63 = vpop.f32.mrf.mxu1 }
 0x1ea   : > { %v1276_v1 = vmax.f32 %v1235_v60, 0.0  ;;  %v1239_v2 = vadd.f32 %v1238_v57, %v1078_v61  ;;  %v1080_v3 = vadd.f32 %v1079_v62, %v2059_v42  ;;  %v1361_v6 = vadd.f32 %v1318_v59, %v1317_v40 }
 0x1eb   : > { %v1083_v4 = vpop.f32.mrf.mxu0  ;;  %v1244_v5 = vpop.f32.mrf.mxu1  ;;  %v1319_v13 = vmul.f32 %v2071_v12, %v1275_v43 }
 0x1ec   : > { %v1320_v7 = vmul.f32 %v2068_v10, %v1276_v1  ;;  %v1277_v8 = vmax.f32 %v1239_v2, 0.0  ;;  %v1241_v9 = vadd.f32 %v1240_v63, %v1080_v3  ;;  %v1084_v11 = vadd.f32 %v1083_v4, %v2056_v41  ;;  %1362 = vadd.xlane.f32.xlu0 %v1361_v6 }
 0x1ed   : > { %v1085_v14 = vpop.f32.mrf.mxu0  ;;  %v1246_v18 = vpop.f32.mrf.mxu1 }
 0x1ee   : > { %v1278_v15 = vmax.f32 %v1241_v9, 0.0  ;;  %v1245_v16 = vadd.f32 %v1244_v5, %v1084_v11  ;;  %v1086_v17 = vadd.f32 %v1085_v14, %v2059_v42  ;;  %v1364_v19 = vadd.f32 %v1320_v7, %v1319_v13 }
 0x1ef   : > { %v1321_v20 = vmul.f32 %v2071_v12, %v1277_v8  ;;  %v2134_v42 = vstv %s1373_s12 }
 0x1f0   : > { %v1322_v21 = vmul.f32 %v2068_v10, %v1278_v15  ;;  %v1279_v22 = vmax.f32 %v1245_v16, 0.0  ;;  %v1247_v23 = vadd.f32 %v1246_v18, %v1086_v17  ;;  %1365 = vadd.xlane.f32.xlu1 %v1364_v19 }
 0x1f2   : > { %v1280_v38 = vmax.f32 %v1247_v23, 0.0  ;;  %v1367_v24 = vadd.f32 %v1322_v21, %v1321_v20  ;;  %v1323_v41 = vmul.f32 %v2071_v12, %v1279_v22 }
 0x1f4   : > { %v1324_v25 = vmul.f32 %v2068_v10, %v1280_v38  ;;  %1368 = vadd.xlane.f32.xlu0 %v1367_v24 }
 0x1f6   : > { %v1370_v0 = vadd.f32 %v1324_v25, %v1323_v41 }
 0x1f8   : > { %1371 = vadd.xlane.f32.xlu1 %v1370_v0 }
 0x245   : > { %v1327_v26 = vpop.xlane.xlu0 %1326 }
 0x246   : > { %v1375_v27 = vadd.f32 %v2134_v42, %v1327_v26 }
 0x248   : > { %v1615_v28 = vmul.f32 -1.442695, %v1375_v27 }
 0x249   : > { %v1330_v29 = vpop.xlane.xlu0 %1329 }
 0x24a   : > { %1655 = vpow2.f32 %v1615_v28  ;;  %v1376_v30 = vadd.f32 %v2134_v42, %v1330_v29 }
 0x24c   : > { %v1616_v31 = vmul.f32 -1.442695, %v1376_v30 }
 0x24d   : > { %v1333_v32 = vpop.xlane.xlu1 %1332 }
 0x24e   : > { %1657 = vpow2.f32 %v1616_v31  ;;  %v1377_v12 = vadd.f32 %v2134_v42, %v1333_v32 }
 0x250   : > { %v1617_v10 = vmul.f32 -1.442695, %v1377_v12 }
 0x251   : > { %v1336_v33 = vpop.xlane.xlu1 %1335 }
 0x252   : > { %1659 = vpow2.f32 %v1617_v10  ;;  %v1378_v34 = vadd.f32 %v2134_v42, %v1336_v33 }
 0x254   : > { %v1618_v35 = vmul.f32 -1.442695, %v1378_v34 }
 0x255   : > { %v1339_v36 = vpop.xlane.xlu0 %1338 }
 0x256   : > { %1661 = vpow2.f32 %v1618_v35  ;;  %v1379_v37 = vadd.f32 %v2134_v42, %v1339_v36 }
 0x257   : > { %v1656_v39 = vpop.eup %1655 }
 0x258   : > { %v1439_v44 = vadd.f32 1.0, %v1656_v39  ;;  %v1619_v45 = vmul.f32 -1.442695, %v1379_v37 }
 0x259   : > { %v1342_v46 = vpop.xlane.xlu1 %1341 }
 0x25a   : > { %1663 = vrcp.f32 %v1439_v44  ;;  %v1380_v47 = vadd.f32 %v2134_v42, %v1342_v46 }
 0x25b   : > { %v1658_v48 = vpop.eup %1657  ;;  %1665 = vpow2.f32 %v1619_v45 }
 0x25c   : > { %v1440_v49 = vadd.f32 1.0, %v1658_v48  ;;  %v1620_v50 = vmul.f32 -1.442695, %v1380_v47 }
 0x25d   : > { %v1345_v51 = vpop.xlane.xlu0 %1344 }
 0x25e   : > { %1667 = vrcp.f32 %v1440_v49  ;;  %v1381_v52 = vadd.f32 %v2134_v42, %v1345_v51 }
 0x25f   : > { %v1660_v53 = vpop.eup %1659  ;;  %1669 = vpow2.f32 %v1620_v50 }
 0x260   : > { %v1441_v54 = vadd.f32 1.0, %v1660_v53  ;;  %v1621_v55 = vmul.f32 -1.442695, %v1381_v52 }
 0x261   : > { %v1348_v56 = vpop.xlane.xlu1 %1347 }
 0x262   : > { %1671 = vrcp.f32 %v1441_v54  ;;  %v1382_v57 = vadd.f32 %v2134_v42, %v1348_v56 }
 0x263   : > { %v1662_v58 = vpop.eup %1661  ;;  %1673 = vpow2.f32 %v1621_v55 }
 0x264   : > { %v1442_v59 = vadd.f32 1.0, %v1662_v58  ;;  %v1622_v60 = vmul.f32 -1.442695, %v1382_v57 }
 0x265   : > { %v1351_v61 = vpop.xlane.xlu0 %1350 }
 0x266   : > { %1675 = vrcp.f32 %v1442_v59  ;;  %v1383_v40 = vadd.f32 %v2134_v42, %v1351_v61 }
 0x267   : > { %v1664_v43 = vpop.eup %1663  ;;  %1677 = vpow2.f32 %v1622_v60 }
 0x268   : > { %v1666_v62 = vpop.eup %1665  ;;  %1488 = vst.msk [vmem:[%s2149_s16] sm:$0xff] %vm1487_vm1, %v1664_v43  ;;  %v1623_v63 = vmul.f32 -1.442695, %v1383_v40 }
 0x269   : > { %v1443_v1 = vadd.f32 1.0, %v1666_v62  ;;  %v1354_v2 = vpop.xlane.xlu1 %1353 }
 0x26a   : > { %1679 = vpow2.f32 %v1623_v63  ;;  %v1384_v3 = vadd.f32 %v2134_v42, %v1354_v2 }
 0x26b   : > { %v1668_v4 = vpop.eup %1667  ;;  %1681 = vrcp.f32 %v1443_v1 }
 0x26c   : > { %v1670_v5 = vpop.eup %1669  ;;  %1489 = vst.msk [vmem:[%s2149_s16 + $0x8] sm:$0xff] %vm1487_vm1, %v1668_v4  ;;  %v1624_v6 = vmul.f32 -1.442695, %v1384_v3 }
 0x26d   : > { %v1444_v7 = vadd.f32 1.0, %v1670_v5  ;;  %v1357_v8 = vpop.xlane.xlu0 %1356 }
 0x26e   : > { %1683 = vpow2.f32 %v1624_v6  ;;  %v1385_v9 = vadd.f32 %v2134_v42, %v1357_v8 }
 0x26f   : > { %v1672_v11 = vpop.eup %1671  ;;  %1685 = vrcp.f32 %v1444_v7 }
 0x270   : > { %v1674_v13 = vpop.eup %1673  ;;  %1490 = vst.msk [vmem:[%s2149_s16 + $0x10] sm:$0xff] %vm1487_vm1, %v1672_v11  ;;  %v1625_v14 = vmul.f32 -1.442695, %v1385_v9 }
 0x271   : > { %v1445_v15 = vadd.f32 1.0, %v1674_v13  ;;  %v1360_v16 = vpop.xlane.xlu1 %1359 }
 0x272   : > { %1687 = vpow2.f32 %v1625_v14  ;;  %v1386_v17 = vadd.f32 %v2134_v42, %v1360_v16 }
 0x273   : > { %v1676_v18 = vpop.eup %1675  ;;  %1689 = vrcp.f32 %v1445_v15 }
 0x274   : > { %v1678_v19 = vpop.eup %1677  ;;  %1491 = vst.msk [vmem:[%s2149_s16 + $0x18] sm:$0xff] %vm1487_vm1, %v1676_v18  ;;  %v1626_v20 = vmul.f32 -1.442695, %v1386_v17 }
 0x275   : > { %v1446_v21 = vadd.f32 1.0, %v1678_v19  ;;  %v1363_v22 = vpop.xlane.xlu0 %1362 }
 0x276   : > { %1691 = vpow2.f32 %v1626_v20  ;;  %v1387_v23 = vadd.f32 %v2134_v42, %v1363_v22 }
 0x277   : > { %v1680_v38 = vpop.eup %1679  ;;  %1693 = vrcp.f32 %v1446_v21 }
 0x278   : > { %v1682_v24 = vpop.eup %1681  ;;  %v1447_v41 = vadd.f32 1.0, %v1680_v38  ;;  %v1627_v25 = vmul.f32 -1.442695, %v1387_v23 }
 0x279   : > { %1492 = vst.msk [vmem:[%s2149_s16 + $0x20] sm:$0xff] %vm1487_vm1, %v1682_v24  ;;  %v1366_v0 = vpop.xlane.xlu1 %1365 }
 0x27a   : > { %1695 = vrcp.f32 %v1447_v41  ;;  %v1388_v26 = vadd.f32 %v2134_v42, %v1366_v0 }
 0x27b   : > { %v1684_v27 = vpop.eup %1683  ;;  %1697 = vpow2.f32 %v1627_v25 }
 0x27c   : > { %v1686_v28 = vpop.eup %1685  ;;  %v1448_v29 = vadd.f32 1.0, %v1684_v27  ;;  %v1628_v30 = vmul.f32 -1.442695, %v1388_v26 }
 0x27d   : > { %v1369_v31 = vpop.xlane.xlu0 %1368  ;;  %1493 = vst.msk [vmem:[%s2149_s16 + $0x28] sm:$0xff] %vm1487_vm1, %v1686_v28 }
 0x27e   : > { %v1389_v32 = vadd.f32 %v2134_v42, %v1369_v31  ;;  %1699 = vrcp.f32 %v1448_v29 }
 0x27f   : > { %v1688_v12 = vpop.eup %1687  ;;  %1701 = vpow2.f32 %v1628_v30 }
 0x280   : > { %v1629_v10 = vmul.f32 -1.442695, %v1389_v32  ;;  %v1690_v33 = vpop.eup %1689  ;;  %v1449_v34 = vadd.f32 1.0, %v1688_v12 }
 0x281   : > { %v1372_v35 = vpop.xlane.xlu1 %1371  ;;  %1494 = vst.msk [vmem:[%s2149_s16 + $0x30] sm:$0xff] %vm1487_vm1, %v1690_v33 }
 0x282   : > { %1703 = vpow2.f32 %v1629_v10  ;;  %v1390_v36 = vadd.f32 %v2134_v42, %v1372_v35 }
 0x283   : > { %1705 = vrcp.f32 %v1449_v34  ;;  %v1692_v37 = vpop.eup %1691 }
 0x284   : > { %v1630_v39 = vmul.f32 -1.442695, %v1390_v36  ;;  %v1694_v44 = vpop.eup %1693  ;;  %v1450_v45 = vadd.f32 1.0, %v1692_v37 }
 0x285   : > { %1495 = vst.msk [vmem:[%s2149_s16 + $0x38] sm:$0xff] %vm1487_vm1, %v1694_v44 }
 0x286   : > { %1707 = vpow2.f32 %v1630_v39 }
 0x287   : > { %1709 = vrcp.f32 %v1450_v45  ;;  %v1696_v46 = vpop.eup %1695 }
 0x288   : > { %v1698_v47 = vpop.eup %1697  ;;  %1496 = vst.msk [vmem:[%s2149_s16 + $0x40] sm:$0xff] %vm1487_vm1, %v1696_v46 }
 0x289   : > { %v1451_v48 = vadd.f32 1.0, %v1698_v47 }
 0x28b   : > { %v1700_v49 = vpop.eup %1699  ;;  %1711 = vrcp.f32 %v1451_v48 }
 0x28c   : > { %v1702_v42 = vpop.eup %1701  ;;  %1497 = vst.msk [vmem:[%s2149_s16 + $0x48] sm:$0xff] %vm1487_vm1, %v1700_v49 }
 0x28d   : > { %v1452_v50 = vadd.f32 1.0, %v1702_v42 }
 0x28f   : > { %v1704_v51 = vpop.eup %1703  ;;  %1713 = vrcp.f32 %v1452_v50 }
 0x290   : > { %v1706_v52 = vpop.eup %1705  ;;  %v1453_v53 = vadd.f32 1.0, %v1704_v51 }
 0x291   : > { %1498 = vst.msk [vmem:[%s2149_s16 + $0x50] sm:$0xff] %vm1487_vm1, %v1706_v52 }
 0x292   : > { %1715 = vrcp.f32 %v1453_v53 }
 0x293   : > { %v1708_v54 = vpop.eup %1707 }
 0x294   : > { %v1710_v55 = vpop.eup %1709  ;;  %v1454_v56 = vadd.f32 1.0, %v1708_v54 }
 0x295   : > { %1499 = vst.msk [vmem:[%s2149_s16 + $0x58] sm:$0xff] %vm1487_vm1, %v1710_v55 }
 0x296   : > { %1717 = vrcp.f32 %v1454_v56 }
 0x298   : > { %v1712_v57 = vpop.eup %1711 }
 0x299   : > { %1500 = vst.msk [vmem:[%s2149_s16 + $0x60] sm:$0xff] %vm1487_vm1, %v1712_v57 }
 0x29c   : > { %v1714_v58 = vpop.eup %1713 }
 0x29d   : > { %1501 = vst.msk [vmem:[%s2149_s16 + $0x68] sm:$0xff] %vm1487_vm1, %v1714_v58 }
 0x29f   : > { %v1716_v59 = vpop.eup %1715 }
 0x2a0   : > { %1502 = vst.msk [vmem:[%s2149_s16 + $0x70] sm:$0xff] %vm1487_vm1, %v1716_v59 }
 0x2a3   : > { %v1718_v60 = vpop.eup %1717 }
 0x2a4   : > { %1503 = vst.msk [vmem:[%s2149_s16 + $0x78] sm:$0xff] %vm1487_vm1, %v1718_v60 }
 0x2a5 PF: > { %s19_s26 = sadd.s32 1, %s1755_s26  }
 0x2a6   : > { %p16_p1 = scmp.ge.s32.totalorder %s19_s26, 5  }
 0x2a8   :  { %18 = sbr.rel (!%p16_p1) target bundleno = 3 (0x3), region = 83 }
 0x2ad   :  { %1526 = vsyncpa [#allocation4], 1 }
 0x2ae   :  { %1528 = vsyncpa [#allocation4 + $0x1], 1 }

</bundles_post_ra>
